<compile_context>
chip_gen: v7x
topology: tpu7x:2x2x1
jax: 0.10.0
libtpu: 0.0.40
codegen_flags: <defaults>
</compile_context>

<pallas_src>
import jax
import jax.numpy as jnp
from jax.experimental import pallas as pl
from jax.experimental.pallas import tpu as pltpu

C_IN = 768                    # BERT hidden size
REDUCTION = 4
C_MID = C_IN // REDUCTION     # 192 (logical adapter bottleneck)
C_MID_PAD = 256               # zero-padded bottleneck for clean MXU tiles
OUT_CHANNELS = 256
MAX_TB = 1024                 # batch-tile cap, safe within v7x's 64 MiB VMEM/TC


def _round_up(n, m):
    return ((n + m - 1) // m) * m


def _head_kernel(x_ref, w1_ref, w2_ref, wp_ref, bp_ref, alpha_ref, o_ref):
    """Fused adapter + residual blend + projection (one batch tile).

    x_ref:     [TB, 768]   CLS features, bf16 (VMEM)
    w1_ref:    [768, 256]  adapter fc1 (zero-padded 192->256), bf16, no bias
    w2_ref:    [256, 768]  adapter fc2 (zero-padded 192->256), bf16, no bias
    wp_ref:    [768, 256]  projection weight, bf16
    bp_ref:    [1, 256]    projection bias, f32
    alpha_ref: [1]         adapter_alpha, f32 (SMEM)
    o_ref:     [TB, 256]   output
    """
    x_bf = x_ref[...]                              # bf16, feeds the MXU directly
    x = x_bf.astype(jnp.float32)                   # f32 copy for the residual blend

    # Adapter: Linear -> ReLU -> Linear -> ReLU  (bf16 MXU, f32 accumulate)
    h = jnp.dot(x_bf, w1_ref[...], preferred_element_type=jnp.float32)
    h = jnp.maximum(h, 0.0)
    a = jnp.dot(h.astype(jnp.bfloat16), w2_ref[...],
                preferred_element_type=jnp.float32)
    a = jnp.maximum(a, 0.0)

    # Residual blend (f32): alpha*a + (1-alpha)*x  ==  x + alpha*(a - x)
    alpha = alpha_ref[0]
    blend = x + alpha * (a - x)

    # Projection: Linear(768 -> 256) + bias, then ReLU
    y = jnp.dot(blend.astype(jnp.bfloat16), wp_ref[...],
                preferred_element_type=jnp.float32)
    y = y + bp_ref[...]
    o_ref[...] = jnp.maximum(y, 0.0).astype(o_ref.dtype)


def prepare_head_params(w1, w2, wp, bp, alpha):
    """One-time parameter prep (do this at init/update time, NOT per call).

    Casts weights to bf16 and zero-pads the 192-wide adapter bottleneck to 256.
    """
    w1p = jnp.zeros((C_IN, C_MID_PAD), jnp.bfloat16)
    w1p = w1p.at[:, :C_MID].set(w1.astype(jnp.bfloat16))
    w2p = jnp.zeros((C_MID_PAD, C_IN), jnp.bfloat16)
    w2p = w2p.at[:C_MID, :].set(w2.astype(jnp.bfloat16))
    wpp = wp.astype(jnp.bfloat16)
    bp2 = bp.reshape(1, OUT_CHANNELS).astype(jnp.float32)
    alpha1 = jnp.asarray(alpha, jnp.float32).reshape(1)
    return w1p, w2p, wpp, bp2, alpha1


def text_encoder_head(text_feat, params, out_dtype=jnp.float32):
    """text_feat: [B, 768] CLS features (bf16 preferred; f32 is cast once)."""
    B, C = text_feat.shape
    assert C == C_IN
    w1p, w2p, wpp, bp2, alpha1 = params

    # Activations travel as bf16 (halves the dominant HBM read).
    x = text_feat if text_feat.dtype == jnp.bfloat16 else text_feat.astype(jnp.bfloat16)

    # Batch tiling: small B -> one full-extent block (no tiling constraints);
    # larger B -> >=2 tiles (multiple of 16 rows, capped at MAX_TB) so the
    # "parallel" batch axis can be sharded across v7x's two TensorCores. The
    # last block may be partial; Pallas masks the boundary (no jnp.pad copy).
    if B <= 64:
        TB = B
    else:
        TB = min(MAX_TB, _round_up(pl.cdiv(B, 2), 16))
    grid = (pl.cdiv(B, TB),)

    weight_bytes = 2 * (C_IN * C_MID_PAD + C_MID_PAD * C_IN + C_IN * OUT_CHANNELS)
    cost = pl.CostEstimate(
        flops=2 * B * (C_IN * C_MID_PAD + C_MID_PAD * C_IN + C_IN * OUT_CHANNELS),
        transcendentals=0,
        bytes_accessed=(B * C_IN * 2                                   # x (bf16)
                        + B * OUT_CHANNELS * jnp.dtype(out_dtype).itemsize
                        + weight_bytes + OUT_CHANNELS * 4 + 4),
    )

    out = pl.pallas_call(
        _head_kernel,
        out_shape=jax.ShapeDtypeStruct((B, OUT_CHANNELS), out_dtype),
        grid=grid,
        in_specs=[
            pl.BlockSpec((TB, C_IN), lambda i: (i, 0)),
            # Weights: constant block index -> resident in VMEM across steps.
            pl.BlockSpec((C_IN, C_MID_PAD), lambda i: (0, 0)),
            pl.BlockSpec((C_MID_PAD, C_IN), lambda i: (0, 0)),
            pl.BlockSpec((C_IN, OUT_CHANNELS), lambda i: (0, 0)),
            pl.BlockSpec((1, OUT_CHANNELS), lambda i: (0, 0)),
            # Scalar alpha lives in SMEM (scalar path, no padded VMEM tile).
            pl.BlockSpec(memory_space=pltpu.MemorySpace.SMEM),
        ],
        out_specs=pl.BlockSpec((TB, OUT_CHANNELS), lambda i: (i, 0)),
        compiler_params=pltpu.CompilerParams(
            dimension_semantics=("parallel",),
            vmem_limit_bytes=40 << 20,        # fits TB=1024 tiles; v7x-safe
        ),
        cost_estimate=cost,
    )(x, w1p, w2p, wpp, bp2, alpha1)

    return out


def _reference(text_feat_bf16, w1, w2, wp, bp, alpha):
    """Mirrors the kernel's bf16-weight/activation, f32-accumulate numerics."""
    bf = jnp.bfloat16
    x32 = text_feat_bf16.astype(jnp.float32)
    h = jnp.maximum(
        jnp.dot(text_feat_bf16.astype(bf), w1.astype(bf),
                preferred_element_type=jnp.float32), 0.0)
    a = jnp.maximum(
        jnp.dot(h.astype(bf), w2.astype(bf),
                preferred_element_type=jnp.float32), 0.0)
    blend = x32 + alpha * (a - x32)
    y = jnp.dot(blend.astype(bf), wp.astype(bf),
                preferred_element_type=jnp.float32) + bp[None, :]
    return jnp.maximum(y, 0.0)


if __name__ == "__main__":
    key = jax.random.PRNGKey(0)
    k_x, k_w1, k_w2, k_wp, k_bp = jax.random.split(key, 5)

    B = 8  # batch of text sequences; kernel consumes CLS features [B, 768]

    # Synthetic stand-in for BERT CLS output (the frozen backbone is not run);
    # shipped as bf16, as the backbone would emit for this bandwidth-bound head.
    text_feat = jax.random.normal(k_x, (B, C_IN), dtype=jnp.float32).astype(jnp.bfloat16)

    # Deterministic parameter init (shapes follow the PyTorch module's __init__).
    w1 = jax.random.normal(k_w1, (C_IN, C_MID), dtype=jnp.float32) * 0.02
    w2 = jax.random.normal(k_w2, (C_MID, C_IN), dtype=jnp.float32) * 0.02
    wp = jax.random.normal(k_wp, (C_IN, OUT_CHANNELS), dtype=jnp.float32) * 0.02
    bp = jax.random.normal(k_bp, (OUT_CHANNELS,), dtype=jnp.float32) * 0.02
    alpha = jnp.float32(0.2)

    params = prepare_head_params(w1, w2, wp, bp, alpha)   # one-time cast/pad
    out = text_encoder_head(text_feat, params)
    out = jax.block_until_ready(out)

    ref = _reference(text_feat, w1, w2, wp, bp, alpha)
    assert out.shape == (B, OUT_CHANNELS)
    assert jnp.allclose(out, ref, atol=1e-2, rtol=1e-2), (
        float(jnp.max(jnp.abs(out - ref))))

    print("KERNEL_OK")
</pallas_src>

<mosaic_0001>
module attributes {stable_mosaic.version = 11 : i64} {
  func.func @_head_kernel(%arg0: i32, %arg1: memref<8x768xbf16, #tpu.memory_space<vmem>>, %arg2: memref<768x256xbf16, #tpu.memory_space<vmem>>, %arg3: memref<256x768xbf16, #tpu.memory_space<vmem>>, %arg4: memref<768x256xbf16, #tpu.memory_space<vmem>>, %arg5: memref<1x256xf32, #tpu.memory_space<vmem>>, %arg6: memref<1xf32, #tpu.memory_space<smem>>, %arg7: memref<8x256xf32, #tpu.memory_space<vmem>>) attributes {dimension_semantics = [#tpu.dimension_semantics<parallel>], iteration_bounds = array<i64: 1>, scalar_prefetch = 0 : i64, scratch_operands = 0 : i64, tpu.core_type = #tpu.core_type<tc>, window_params = [{transform_indices = @transform_0, window_bounds = array<i64: 8, 768>}, {pipeline_mode = #tpu.pipeline_mode<synchronous>, transform_indices = @transform_1, window_bounds = array<i64: 768, 256>}, {pipeline_mode = #tpu.pipeline_mode<synchronous>, transform_indices = @transform_2, window_bounds = array<i64: 256, 768>}, {pipeline_mode = #tpu.pipeline_mode<synchronous>, transform_indices = @transform_3, window_bounds = array<i64: 768, 256>}, {pipeline_mode = #tpu.pipeline_mode<synchronous>, transform_indices = @transform_4, window_bounds = array<i64: 1, 256>}, {transform_indices = @transform_5, window_bounds = array<i64: 1>}, {transform_indices = @transform_6, window_bounds = array<i64: 8, 256>}]} {
    %c0 = arith.constant 0 : index
    %c0_0 = arith.constant 0 : index
    %0 = vector.load %arg1[%c0, %c0_0] : memref<8x768xbf16, #tpu.memory_space<vmem>>, vector<8x768xbf16>
    %1 = arith.extf %0 : vector<8x768xbf16> to vector<8x768xf32>
    %c0_1 = arith.constant 0 : index
    %c0_2 = arith.constant 0 : index
    %2 = vector.load %arg2[%c0_1, %c0_2] : memref<768x256xbf16, #tpu.memory_space<vmem>>, vector<768x256xbf16>
    %cst = arith.constant dense<0.000000e+00> : vector<8x256xf32>
    %3 = tpu.matmul %0, %2, %cst {dimension_numbers = #tpu.dot_dimension_numbers<[1], [0], [0], [1], [0, 0, 1, 1], [], []>} : vector<8x768xbf16>, vector<768x256xbf16>, vector<8x256xf32> -> vector<8x256xf32>
    %cst_3 = arith.constant 0.000000e+00 : f32
    %4 = vector.broadcast %cst_3 : f32 to vector<8x256xf32>
    %5 = arith.maximumf %3, %4 : vector<8x256xf32>
    %6 = arith.truncf %5 : vector<8x256xf32> to vector<8x256xbf16>
    %c0_4 = arith.constant 0 : index
    %c0_5 = arith.constant 0 : index
    %7 = vector.load %arg3[%c0_4, %c0_5] : memref<256x768xbf16, #tpu.memory_space<vmem>>, vector<256x768xbf16>
    %cst_6 = arith.constant dense<0.000000e+00> : vector<8x768xf32>
    %8 = tpu.matmul %6, %7, %cst_6 {dimension_numbers = #tpu.dot_dimension_numbers<[1], [0], [0], [1], [0, 0, 1, 1], [], []>} : vector<8x256xbf16>, vector<256x768xbf16>, vector<8x768xf32> -> vector<8x768xf32>
    %cst_7 = arith.constant 0.000000e+00 : f32
    %9 = vector.broadcast %cst_7 : f32 to vector<8x768xf32>
    %10 = arith.maximumf %8, %9 : vector<8x768xf32>
    %c0_8 = arith.constant 0 : index
    %11 = memref.load %arg6[%c0_8] : memref<1xf32, #tpu.memory_space<smem>>
    %12 = arith.subf %10, %1 : vector<8x768xf32>
    %13 = vector.broadcast %11 : f32 to vector<8x768xf32>
    %14 = arith.mulf %13, %12 : vector<8x768xf32>
    %15 = arith.addf %1, %14 : vector<8x768xf32>
    %16 = arith.truncf %15 : vector<8x768xf32> to vector<8x768xbf16>
    %c0_9 = arith.constant 0 : index
    %c0_10 = arith.constant 0 : index
    %17 = vector.load %arg4[%c0_9, %c0_10] : memref<768x256xbf16, #tpu.memory_space<vmem>>, vector<768x256xbf16>
    %cst_11 = arith.constant dense<0.000000e+00> : vector<8x256xf32>
    %18 = tpu.matmul %16, %17, %cst_11 {dimension_numbers = #tpu.dot_dimension_numbers<[1], [0], [0], [1], [0, 0, 1, 1], [], []>} : vector<8x768xbf16>, vector<768x256xbf16>, vector<8x256xf32> -> vector<8x256xf32>
    %c0_12 = arith.constant 0 : index
    %c0_13 = arith.constant 0 : index
    %19 = vector.load %arg5[%c0_12, %c0_13] : memref<1x256xf32, #tpu.memory_space<vmem>>, vector<1x256xf32>
    %20 = vector.broadcast %19 : vector<1x256xf32> to vector<8x256xf32>
    %21 = arith.addf %18, %20 : vector<8x256xf32>
    %cst_14 = arith.constant 0.000000e+00 : f32
    %22 = vector.broadcast %cst_14 : f32 to vector<8x256xf32>
    %23 = arith.maximumf %21, %22 : vector<8x256xf32>
    %c0_15 = arith.constant 0 : index
    %c0_16 = arith.constant 0 : index
    %24 = vector.load %arg7[%c0_15, %c0_16] : memref<8x256xf32, #tpu.memory_space<vmem>>, vector<8x256xf32>
    tpu.vector_store %arg7[%c0_15, %c0_16], %23 {strides = array<i32>} : memref<8x256xf32, #tpu.memory_space<vmem>>, vector<8x256xf32>,
    return
  }
  func.func @transform_0(%arg0: i32) -> (i32, i32) {
    %c0_i32 = arith.constant 0 : i32
    %c0_i32_0 = arith.constant 0 : i32
    return %arg0, %c0_i32 : i32, i32
  }
  func.func @transform_1(%arg0: i32) -> (i32, i32) {
    %c0_i32 = arith.constant 0 : i32
    %c0_i32_0 = arith.constant 0 : i32
    %c0_i32_1 = arith.constant 0 : i32
    return %c0_i32, %c0_i32_0 : i32, i32
  }
  func.func @transform_2(%arg0: i32) -> (i32, i32) {
    %c0_i32 = arith.constant 0 : i32
    %c0_i32_0 = arith.constant 0 : i32
    %c0_i32_1 = arith.constant 0 : i32
    return %c0_i32, %c0_i32_0 : i32, i32
  }
  func.func @transform_3(%arg0: i32) -> (i32, i32) {
    %c0_i32 = arith.constant 0 : i32
    %c0_i32_0 = arith.constant 0 : i32
    %c0_i32_1 = arith.constant 0 : i32
    return %c0_i32, %c0_i32_0 : i32, i32
  }
  func.func @transform_4(%arg0: i32) -> (i32, i32) {
    %c0_i32 = arith.constant 0 : i32
    %c0_i32_0 = arith.constant 0 : i32
    %c0_i32_1 = arith.constant 0 : i32
    return %c0_i32, %c0_i32_0 : i32, i32
  }
  func.func @transform_5(%arg0: i32) -> i32 {
    %c0_i32 = arith.constant 0 : i32
    %c0_i32_0 = arith.constant 0 : i32
    return %c0_i32 : i32
  }
  func.func @transform_6(%arg0: i32) -> (i32, i32) {
    %c0_i32 = arith.constant 0 : i32
    %c0_i32_0 = arith.constant 0 : i32
    return %arg0, %c0_i32 : i32, i32
  }
}

</mosaic_0001>

<bundles_post_ra>
// kernel: tpu_custom_call.1
= control target key start
LH: loop header
LB: loop body
LE: loop exit
PB: predicated region body
PF: predicated region fallthrough
CT: control target
= control target key end

     0   :  { %12 = vsyncpa [#allocation4], 0  ;;  %s3298_s0 = inlined_call_operand.hbm [shape: bf16[8,768], index: 0, kind: input, shape index: {}]   ;;  %s3299_s1 = inlined_call_operand.hbm [shape: bf16[768,256], index: 1, kind: input, shape index: {}]   ;;  %s3300_s2 = inlined_call_operand.hbm [shape: bf16[256,768], index: 2, kind: input, shape index: {}]   ;;  %s3301_s3 = inlined_call_operand.hbm [shape: bf16[768,256], index: 3, kind: input, shape index: {}]   ;;  %s3302_s4 = inlined_call_operand.vmem [shape: f32[1,256], index: 4, kind: input, shape index: {}]   ;;  %s3303_s5 = inlined_call_operand.<no memory space> [shape: f32[1], index: 5, kind: input, shape index: {}]   ;;  %s3304_s6 = inlined_call_operand.hbm [shape: f32[8,256], index: 6, kind: output, shape index: {}]  }
   0x1   :  { %13 = vsyncpa [#allocation7], 0 }
   0x2   :  { %14 = vsyncpa [#allocation10], 0 }
   0x3   :  { %15 = vsyncpa [#allocation5], 0  ;;  %s3152_s21 = smov [#allocation6]   ;;  %s3034_s25 = scalar_lea.hbm %s3299_s1, 12288 }
   0x4   :  { %s31_s22 = sshll.u32 %s3152_s21, 4  ;;  %p3035_p0 = scmp.ne.s32.totalorder %s3299_s1, %s3034_s25  ;;  %s32_s22 = int_to_ptr.vmem [resolvable:$true] %s31_s22 }
   0x5   :  { %p3038_p1 = scmp.lt.u32.totalorder %s3034_s25, %s3299_s1 }
   0x7   :  { %p3040_p2 = pnand %p3038_p1, %p3035_p0 }
   0x9   :  { %3043 = shalt.err (!%p3040_p2)
}
   0xa   :  { %s3044_s30 = scalar_lea.vmem %s32_s22, 12288  ;;  %p3049_p4 = scmp.lt.s32.totalorder %s32_s22, %s32_s22 }
   0xb   :  { %p3045_p3 = scmp.ne.s32.totalorder %s32_s22, %s3044_s30  ;;  %p3050_p5 = scmp.lt.s32.totalorder %s3044_s30, %s3044_s30 }
   0xd   :  { %p3051_p6 = por %p3050_p5, %p3049_p4 }
   0xf   :  { %p3052_p7 = pnand %p3051_p6, %p3045_p3 }
  0x11   :  { %3055 = shalt.err (!%p3052_p7)
}
  0x12   :  { %s3153_s7 = smov 128   ;;  %s3154_s8 = smov 8  }
  0x13   :  { %37 = dma.hbm_to_vmem [thread:$0]  %s3299_s1, 12288, %s32_s22, [#allocation7], %s3153_s7, %s3153_s7, %s3154_s8  }
  0x14   :  { %s3155_s11 = smov [#allocation3]   ;;  %s3156_s13 = smov [#allocation8]  }
  0x15   :  { %s22_s12 = sshll.u32 %s3155_s11, 4  ;;  %s43_s14 = sshll.u32 %s3156_s13, 4  ;;  %s23_s12 = int_to_ptr.vmem [resolvable:$true] %s22_s12  ;;  %s44_s14 = int_to_ptr.vmem [resolvable:$true] %s43_s14 }
  0x16   :  { %s3056_s17 = scalar_lea.hbm %s3298_s0, 384 }
  0x17   :  { %p3057_p8 = scmp.ne.s32.totalorder %s3298_s0, %s3056_s17  ;;  %p3060_p9 = scmp.lt.u32.totalorder %s3056_s17, %s3298_s0 }
  0x19   :  { %p3062_p10 = pnand %p3060_p9, %p3057_p8 }
  0x1b   :  { %3065 = shalt.err (!%p3062_p10)
}
  0x1c   :  { %s3066_s1 = scalar_lea.vmem %s23_s12, 384  ;;  %p3071_p12 = scmp.lt.s32.totalorder %s23_s12, %s23_s12 }
  0x1d   :  { %p3067_p11 = scmp.ne.s32.totalorder %s23_s12, %s3066_s1  ;;  %p3072_p13 = scmp.lt.s32.totalorder %s3066_s1, %s3066_s1 }
  0x1f   :  { %p3073_p0 = por %p3072_p13, %p3071_p12 }
  0x21   :  { %p3074_p1 = pnand %p3073_p0, %p3067_p11 }
  0x23   :  { %3077 = shalt.err (!%p3074_p1)
}
  0x24   :  { %25 = dma.hbm_to_vmem [thread:$0]  %s3298_s0, 384, %s23_s12, [#allocation4]  }
  0x25   :  { %s3078_s26 = scalar_lea.hbm %s3300_s2, 12288 }
  0x26   :  { %p3079_p2 = scmp.ne.s32.totalorder %s3300_s2, %s3078_s26  ;;  %p3082_p3 = scmp.lt.u32.totalorder %s3078_s26, %s3300_s2 }
  0x28   :  { %p3084_p4 = pnand %p3082_p3, %p3079_p2 }
  0x2a   :  { %3087 = shalt.err (!%p3084_p4)
}
  0x2b   :  { %s3088_s9 = scalar_lea.vmem %s44_s14, 12288  ;;  %p3093_p6 = scmp.lt.s32.totalorder %s44_s14, %s44_s14 }
  0x2c   :  { %p3089_p5 = scmp.ne.s32.totalorder %s44_s14, %s3088_s9  ;;  %p3094_p7 = scmp.lt.s32.totalorder %s3088_s9, %s3088_s9 }
  0x2e   :  { %p3095_p8 = por %p3094_p7, %p3093_p6 }
  0x30   :  { %p3096_p9 = pnand %p3095_p8, %p3089_p5 }
  0x32   :  { %3099 = shalt.err (!%p3096_p9)
}
  0x33   :  { %s3157_s0 = smov 384   ;;  %s3158_s10 = smov 24  }
  0x34   :  { %49 = dma.hbm_to_vmem [thread:$0]  %s3300_s2, 12288, %s44_s14, [#allocation7], %s3157_s0, %s3157_s0, %s3158_s10  }
  0x35   :  { %s3159_s13 = smov [#allocation9]   ;;  %s3100_s18 = scalar_lea.hbm %s3301_s3, 12288 }
  0x36   :  { %s55_s15 = sshll.u32 %s3159_s13, 4  ;;  %p3101_p10 = scmp.ne.s32.totalorder %s3301_s3, %s3100_s18  ;;  %s56_s15 = int_to_ptr.vmem [resolvable:$true] %s55_s15 }
  0x37   :  { %p3104_p11 = scmp.lt.u32.totalorder %s3100_s18, %s3301_s3 }
  0x39   :  { %p3106_p12 = pnand %p3104_p11, %p3101_p10 }
  0x3b   :  { %3109 = shalt.err (!%p3106_p12)
}
  0x3c   :  { %s3110_s22 = scalar_lea.vmem %s56_s15, 12288  ;;  %p3115_p0 = scmp.lt.s32.totalorder %s56_s15, %s56_s15 }
  0x3d   :  { %p3111_p13 = scmp.ne.s32.totalorder %s56_s15, %s3110_s22  ;;  %p3116_p1 = scmp.lt.s32.totalorder %s3110_s22, %s3110_s22 }
  0x3f   :  { %p3117_p2 = por %p3116_p1, %p3115_p0 }
  0x41   :  { %p3118_p3 = pnand %p3117_p2, %p3111_p13 }
  0x43   :  { %3121 = shalt.err (!%p3118_p3)
}
  0x44   :  { %61 = dma.hbm_to_vmem [thread:$0]  %s3301_s3, 12288, %s56_s15, [#allocation10], %s3153_s7, %s3153_s7, %s3154_s8  }
  0x45   :  { %3144 = dma.done.wait [#allocation4], 384  }
  0x46   :  { %3145 = vsyncadd [#allocation4], 4294966912 }
  0x47   :  { %3146 = dma.done.wait [#allocation7], 24576  }
  0x48   :  { %3147 = vsyncadd [#allocation7], 4294942720 }
  0x49   :  { %3148 = dma.done.wait [#allocation10], 12288  }
  0x4a   :  { %3149 = vsyncadd [#allocation10], 4294955008  ;;  %v2593_v0 = vld [vmem:[#allocation6 + $0x104] ss:$8 sps:$4 sm:$0xff]   ;;  %v2595_v1 = vld [vmem:[#allocation6 + $0x100] ss:$8 sps:$4 sm:$0xff]  }
  0x4b   :  { %725 = vmatprep.subr.bf16.mxu0 %v2593_v0  ;;  %v2596_v2 = vld [vmem:[#allocation6 + $0x114] ss:$8 sps:$4 sm:$0xff]   ;;  %v2598_v3 = vld [vmem:[#allocation6 + $0x110] ss:$8 sps:$4 sm:$0xff]   ;;  %v2599_v4 = vld [vmem:[#allocation6 + $0x124] ss:$8 sps:$4 sm:$0xff]  }
  0x4c   :  { %726 = vmatpush1.bf16.msra.mxu0 %v2595_v1  ;;  %v2601_v5 = vld [vmem:[#allocation6 + $0x120] ss:$8 sps:$4 sm:$0xff]   ;;  %v2602_v6 = vld [vmem:[#allocation6 + $0x134] ss:$8 sps:$4 sm:$0xff]   ;;  %v2604_v7 = vld [vmem:[#allocation6 + $0x130] ss:$8 sps:$4 sm:$0xff]  }
  0x4d   :  { %727 = vmatprep.subr.bf16.mxu0 %v2596_v2  ;;  %v2605_v8 = vld [vmem:[#allocation6 + $0x144] ss:$8 sps:$4 sm:$0xff]   ;;  %v2607_v9 = vld [vmem:[#allocation6 + $0x140] ss:$8 sps:$4 sm:$0xff]   ;;  %v2608_v10 = vld [vmem:[#allocation6 + $0x154] ss:$8 sps:$4 sm:$0xff]  }
  0x4e   :  { %v2610_v11 = vld [vmem:[#allocation6 + $0x150] ss:$8 sps:$4 sm:$0xff]   ;;  %v2611_v12 = vld [vmem:[#allocation6 + $0x164] ss:$8 sps:$4 sm:$0xff]   ;;  %v2643_v14 = vld [vmem:[#allocation6] ss:$8 sps:$4 sm:$0xff]  }
  0x4f   :  { %v2640_v13 = vld [vmem:[#allocation6 + $0x4] ss:$8 sps:$4 sm:$0xff]   ;;  %v3250_v15 = vld [vmem:[#allocation3 + $0x8] sm:$0xff]  ;;  %v2613_v16 = vld [vmem:[#allocation6 + $0x160] ss:$8 sps:$4 sm:$0xff]   ;;  %s3160_s23 = smov [#allocation11]  }
  0x50   :  { %728 = vmatpush1.bf16.msra.mxu0 %v2598_v3  ;;  %684 = vmatprep.subr.bf16.mxu1 %v2640_v13  ;;  %v2277_v17 = vcombine.high %v3250_v15, %v3250_v15  ;;  %v2614_v18 = vld [vmem:[#allocation6 + $0x174] ss:$8 sps:$4 sm:$0xff]   ;;  %v2651_v20 = vld [vmem:[#allocation6 + $0x10] ss:$8 sps:$4 sm:$0xff]   ;;  %v2617_v22 = vld [vmem:[#allocation6 + $0x184] ss:$8 sps:$4 sm:$0xff]   ;;  %v2276_v59 = vcombine.low %v3250_v15, %v3250_v15 }
  0x51   :  { %729 = vmatprep.subr.bf16.mxu0 %v2599_v4  ;;  %685 = vmatpush1.bf16.msra.mxu1 %v2643_v14  ;;  %v2648_v19 = vld [vmem:[#allocation6 + $0x14] ss:$8 sps:$4 sm:$0xff]   ;;  %v2616_v21 = vld [vmem:[#allocation6 + $0x170] ss:$8 sps:$4 sm:$0xff]   ;;  %v2655_v23 = vld [vmem:[#allocation6 + $0x24] ss:$8 sps:$4 sm:$0xff]  }
  0x52   :  { %757 = vmatprep.mubr.bf16.mxu0 %v2277_v17  ;;  %686 = vmatprep.subr.bf16.mxu1 %v2648_v19  ;;  %v2657_v24 = vld [vmem:[#allocation6 + $0x20] ss:$8 sps:$4 sm:$0xff]   ;;  %v2661_v26 = vld [vmem:[#allocation6 + $0x34] ss:$8 sps:$4 sm:$0xff]   ;;  %v2663_v28 = vld [vmem:[#allocation6 + $0x30] ss:$8 sps:$4 sm:$0xff]  }
  0x53   :  { %v2619_v25 = vld [vmem:[#allocation6 + $0x180] ss:$8 sps:$4 sm:$0xff]   ;;  %v2620_v27 = vld [vmem:[#allocation6 + $0x194] ss:$8 sps:$4 sm:$0xff]   ;;  %v2667_v29 = vld [vmem:[#allocation6 + $0x44] ss:$8 sps:$4 sm:$0xff]  }
  0x54   :  { %730 = vmatpush1.bf16.msra.mxu0 %v2601_v5  ;;  %v2622_v30 = vld [vmem:[#allocation6 + $0x190] ss:$8 sps:$4 sm:$0xff]   ;;  %v2623_v31 = vld [vmem:[#allocation6 + $0x1a4] ss:$8 sps:$4 sm:$0xff]   ;;  %v2669_v32 = vld [vmem:[#allocation6 + $0x40] ss:$8 sps:$4 sm:$0xff]  }
  0x55   :  { %731 = vmatprep.subr.bf16.mxu0 %v2602_v6  ;;  %687 = vmatpush1.bf16.msra.mxu1 %v2651_v20  ;;  %v2673_v33 = vld [vmem:[#allocation6 + $0x54] ss:$8 sps:$4 sm:$0xff]   ;;  %v2625_v34 = vld [vmem:[#allocation6 + $0x1a0] ss:$8 sps:$4 sm:$0xff]   ;;  %v2675_v36 = vld [vmem:[#allocation6 + $0x50] ss:$8 sps:$4 sm:$0xff]  }
  0x56   :  { %688 = vmatprep.subr.bf16.mxu1 %v2655_v23  ;;  %v2626_v35 = vld [vmem:[#allocation6 + $0x1b4] ss:$8 sps:$4 sm:$0xff]   ;;  %v2679_v37 = vld [vmem:[#allocation6 + $0x64] ss:$8 sps:$4 sm:$0xff]   ;;  %v2628_v38 = vld [vmem:[#allocation6 + $0x1b0] ss:$8 sps:$4 sm:$0xff]  }
  0x57   :  { %v2629_v39 = vld [vmem:[#allocation6 + $0x1c4] ss:$8 sps:$4 sm:$0xff]   ;;  %v2681_v40 = vld [vmem:[#allocation6 + $0x60] ss:$8 sps:$4 sm:$0xff]   ;;  %v2685_v41 = vld [vmem:[#allocation6 + $0x74] ss:$8 sps:$4 sm:$0xff]  }
  0x58   :  { %732 = vmatpush1.bf16.msra.mxu0 %v2604_v7  ;;  %v2631_v42 = vld [vmem:[#allocation6 + $0x1c0] ss:$8 sps:$4 sm:$0xff]   ;;  %v2632_v43 = vld [vmem:[#allocation6 + $0x1d4] ss:$8 sps:$4 sm:$0xff]   ;;  %v2687_v44 = vld [vmem:[#allocation6 + $0x70] ss:$8 sps:$4 sm:$0xff]  }
  0x59   :  { %733 = vmatprep.subr.bf16.mxu0 %v2605_v8  ;;  %689 = vmatpush1.bf16.msra.mxu1 %v2657_v24  ;;  %v2691_v45 = vld [vmem:[#allocation6 + $0x84] ss:$8 sps:$4 sm:$0xff]   ;;  %v2634_v46 = vld [vmem:[#allocation6 + $0x1d0] ss:$8 sps:$4 sm:$0xff]   ;;  %v2693_v48 = vld [vmem:[#allocation6 + $0x80] ss:$8 sps:$4 sm:$0xff]  }
  0x5a   :  { %690 = vmatprep.subr.bf16.mxu1 %v2661_v26  ;;  %v2635_v47 = vld [vmem:[#allocation6 + $0x1e4] ss:$8 sps:$4 sm:$0xff]   ;;  %v2697_v49 = vld [vmem:[#allocation6 + $0x94] ss:$8 sps:$4 sm:$0xff]   ;;  %v2637_v50 = vld [vmem:[#allocation6 + $0x1e0] ss:$8 sps:$4 sm:$0xff]  }
  0x5b   :  { %v2638_v51 = vld [vmem:[#allocation6 + $0x1f4] ss:$8 sps:$4 sm:$0xff]   ;;  %v2699_v52 = vld [vmem:[#allocation6 + $0x90] ss:$8 sps:$4 sm:$0xff]   ;;  %v2703_v53 = vld [vmem:[#allocation6 + $0xa4] ss:$8 sps:$4 sm:$0xff]  }
  0x5c   :  { %734 = vmatpush1.bf16.msra.mxu0 %v2607_v9  ;;  %v2642_v54 = vld [vmem:[#allocation6 + $0x1f0] ss:$8 sps:$4 sm:$0xff]   ;;  %v2647_v55 = vld [vmem:[#allocation6 + $0x204] ss:$8 sps:$4 sm:$0xff]   ;;  %v2705_v56 = vld [vmem:[#allocation6 + $0xa0] ss:$8 sps:$4 sm:$0xff]  }
  0x5d   :  { %735 = vmatprep.subr.bf16.mxu0 %v2608_v10  ;;  %691 = vmatpush1.bf16.msra.mxu1 %v2663_v28  ;;  %v2709_v57 = vld [vmem:[#allocation6 + $0xb4] ss:$8 sps:$4 sm:$0xff]   ;;  %v2645_v58 = vld [vmem:[#allocation6 + $0x200] ss:$8 sps:$4 sm:$0xff]   ;;  %v2711_v62 = vld [vmem:[#allocation6 + $0xb0] ss:$8 sps:$4 sm:$0xff]  }
  0x5e   :  { %692 = vmatprep.subr.bf16.mxu1 %v2667_v29  ;;  %v78_v60 = vld [vmem:[#allocation3] sm:$0xff]  ;;  %v2654_v61 = vld [vmem:[#allocation6 + $0x214] ss:$8 sps:$4 sm:$0xff]   ;;  %v2652_v3 = vld [vmem:[#allocation6 + $0x210] ss:$8 sps:$4 sm:$0xff]   ;;  %s2263_s24 = sshll.u32 %s3160_s23, 4  ;;  %s2264_s24 = int_to_ptr.vmem [resolvable:$true] %s2263_s24 }
  0x5f   :  { %v2275_v63 = vcombine.high %v78_v60, %v78_v60  ;;  %v3256_v0 = vld [vmem:[#allocation3 + $0x10] sm:$0xff]  ;;  %v2715_v1 = vld [vmem:[#allocation6 + $0xc4] ss:$8 sps:$4 sm:$0xff]   ;;  %v2717_v5 = vld [vmem:[#allocation6 + $0xc0] ss:$8 sps:$4 sm:$0xff]   ;;  %s3122_s25 = scalar_lea.vmem %s2264_s24, 256  ;;  %p3127_p5 = scmp.lt.s32.totalorder %s2264_s24, %s2264_s24 }
  0x60   :  { %736 = vmatpush1.bf16.msra.mxu0 %v2610_v11  ;;  %v2279_v2 = vcombine.high %v3256_v0, %v3256_v0  ;;  %v2660_v4 = vld [vmem:[#allocation6 + $0x224] ss:$8 sps:$4 sm:$0xff]   ;;  %v2721_v6 = vld [vmem:[#allocation6 + $0xd4] ss:$8 sps:$4 sm:$0xff]   ;;  %v2658_v7 = vld [vmem:[#allocation6 + $0x220] ss:$8 sps:$4 sm:$0xff]   ;;  %p3123_p4 = scmp.ne.s32.totalorder %s2264_s24, %s3122_s25  ;;  %p3128_p6 = scmp.lt.s32.totalorder %s3122_s25, %s3122_s25 }
  0x61   :  { %737 = vmatprep.subr.bf16.mxu0 %v2611_v12  ;;  %693 = vmatpush1.bf16.msra.mxu1 %v2669_v32  ;;  %v2666_v8 = vld [vmem:[#allocation6 + $0x234] ss:$8 sps:$4 sm:$0xff]   ;;  %v2723_v9 = vld [vmem:[#allocation6 + $0xd0] ss:$8 sps:$4 sm:$0xff]   ;;  %v2727_v10 = vld [vmem:[#allocation6 + $0xe4] ss:$8 sps:$4 sm:$0xff]  }
  0x62   :  { %694 = vmatprep.subr.bf16.mxu1 %v2673_v33  ;;  %716 = vmatprep.mubr.bf16.mxu1 %v2275_v63  ;;  %v2664_v11 = vld [vmem:[#allocation6 + $0x230] ss:$8 sps:$4 sm:$0xff]   ;;  %v2672_v12 = vld [vmem:[#allocation6 + $0x244] ss:$8 sps:$4 sm:$0xff]   ;;  %v2729_v13 = vld [vmem:[#allocation6 + $0xe0] ss:$8 sps:$4 sm:$0xff]   ;;  %v2278_v63 = vcombine.low %v3256_v0, %v3256_v0  ;;  %p3129_p7 = por %p3128_p6, %p3127_p5 }
  0x63   :  { %v2733_v14 = vld [vmem:[#allocation6 + $0xf4] ss:$8 sps:$4 sm:$0xff]   ;;  %v2670_v15 = vld [vmem:[#allocation6 + $0x240] ss:$8 sps:$4 sm:$0xff]   ;;  %v2735_v17 = vld [vmem:[#allocation6 + $0xf0] ss:$8 sps:$4 sm:$0xff]  }
  0x64   :  { %738 = vmatpush1.bf16.msra.mxu0 %v2613_v16  ;;  %v2678_v16 = vld [vmem:[#allocation6 + $0x254] ss:$8 sps:$4 sm:$0xff]   ;;  %v2684_v20 = vld [vmem:[#allocation6 + $0x264] ss:$8 sps:$4 sm:$0xff]   ;;  %v2682_v24 = vld [vmem:[#allocation6 + $0x260] ss:$8 sps:$4 sm:$0xff]   ;;  %p3130_p8 = pnand %p3129_p7, %p3123_p4 }
  0x65   :  { %739 = vmatprep.subr.bf16.mxu0 %v2614_v18  ;;  %695 = vmatpush1.bf16.msra.mxu1 %v2675_v36  ;;  %v2676_v18 = vld [vmem:[#allocation6 + $0x250] ss:$8 sps:$4 sm:$0xff]   ;;  %v2745_v19 = vld [vmem:[#allocation8 + $0x4] ss:$24 sps:$4 sm:$0xff]   ;;  %v2748_v23 = vld [vmem:[#allocation8 + $0x34] ss:$24 sps:$4 sm:$0xff]  }
  0x66   :  { %696 = vmatprep.subr.bf16.mxu1 %v2679_v37  ;;  %v2746_v26 = vld [vmem:[#allocation8 + $0x30] ss:$24 sps:$4 sm:$0xff]   ;;  %v2696_v29 = vld [vmem:[#allocation6 + $0x284] ss:$8 sps:$4 sm:$0xff]   ;;  %v2702_v33 = vld [vmem:[#allocation6 + $0x294] ss:$8 sps:$4 sm:$0xff]  }
  0x67   :  { %v2688_v28 = vld [vmem:[#allocation6 + $0x270] ss:$8 sps:$4 sm:$0xff]   ;;  %v2694_v32 = vld [vmem:[#allocation6 + $0x280] ss:$8 sps:$4 sm:$0xff]   ;;  %v2708_v37 = vld [vmem:[#allocation6 + $0x2a4] ss:$8 sps:$4 sm:$0xff]  }
  0x68   :  { %740 = vmatpush1.bf16.msra.mxu0 %v2616_v21  ;;  %v2274_v21 = vcombine.low %v78_v60, %v78_v60  ;;  %v2700_v36 = vld [vmem:[#allocation6 + $0x290] ss:$8 sps:$4 sm:$0xff]  }
  0x69   :  { %741 = vmatprep.subr.bf16.mxu0 %v2617_v22  ;;  %697 = vmatpush1.bf16.msra.mxu1 %v2681_v40  ;;  %v2743_v22 = vld [vmem:[#allocation8] ss:$24 sps:$4 sm:$0xff]   ;;  %v2788_v0 = vld [vmem:[#allocation8 + $0x2d0] ss:$24 sps:$4 sm:$0xff]  }
  0x6a   :  { %698 = vmatprep.subr.bf16.mxu1 %v2685_v41  ;;  %v2706_v40 = vld [vmem:[#allocation6 + $0x2a0] ss:$8 sps:$4 sm:$0xff]   ;;  %v2714_v41 = vld [vmem:[#allocation6 + $0x2b4] ss:$8 sps:$4 sm:$0xff]   ;;  %v2737_v60 = vld [vmem:[#allocation6 + $0x2f0] ss:$8 sps:$4 sm:$0xff]  }
  0x6c   :  { %742 = vmatpush1.bf16.msra.mxu0 %v2619_v25  ;;  %v2690_v25 = vld [vmem:[#allocation6 + $0x274] ss:$8 sps:$4 sm:$0xff]  }
  0x6d   :  { %743 = vmatprep.subr.bf16.mxu0 %v2620_v27  ;;  %699 = vmatpush1.bf16.msra.mxu1 %v2687_v44  ;;  %v2751_v27 = vld [vmem:[#allocation8 + $0x64] ss:$24 sps:$4 sm:$0xff]   ;;  %v2712_v44 = vld [vmem:[#allocation6 + $0x2b0] ss:$8 sps:$4 sm:$0xff]  }
  0x6e   :  { %700 = vmatprep.subr.bf16.mxu1 %v2691_v45  ;;  %v2720_v45 = vld [vmem:[#allocation6 + $0x2c4] ss:$8 sps:$4 sm:$0xff]  }
  0x70   :  { %744 = vmatpush1.bf16.msra.mxu0 %v2622_v30  ;;  %v2749_v30 = vld [vmem:[#allocation8 + $0x60] ss:$24 sps:$4 sm:$0xff]  }
  0x71   :  { %745 = vmatprep.subr.bf16.mxu0 %v2623_v31  ;;  %701 = vmatpush1.bf16.msra.mxu1 %v2693_v48  ;;  %v2754_v31 = vld [vmem:[#allocation8 + $0x94] ss:$24 sps:$4 sm:$0xff]   ;;  %v2718_v48 = vld [vmem:[#allocation6 + $0x2c0] ss:$8 sps:$4 sm:$0xff]  }
  0x72   :  { %702 = vmatprep.subr.bf16.mxu1 %v2697_v49  ;;  %v2726_v49 = vld [vmem:[#allocation6 + $0x2d4] ss:$8 sps:$4 sm:$0xff]  }
  0x74   :  { %746 = vmatpush1.bf16.msra.mxu0 %v2625_v34  ;;  %v2752_v34 = vld [vmem:[#allocation8 + $0x90] ss:$24 sps:$4 sm:$0xff]  }
  0x75   :  { %747 = vmatprep.subr.bf16.mxu0 %v2626_v35  ;;  %703 = vmatpush1.bf16.msra.mxu1 %v2699_v52  ;;  %v2757_v35 = vld [vmem:[#allocation8 + $0xc4] ss:$24 sps:$4 sm:$0xff]   ;;  %v2724_v52 = vld [vmem:[#allocation6 + $0x2d0] ss:$8 sps:$4 sm:$0xff]  }
  0x76   :  { %704 = vmatprep.subr.bf16.mxu1 %v2703_v53  ;;  %v2732_v53 = vld [vmem:[#allocation6 + $0x2e4] ss:$8 sps:$4 sm:$0xff]  }
  0x78   :  { %748 = vmatpush1.bf16.msra.mxu0 %v2628_v38  ;;  %v2755_v38 = vld [vmem:[#allocation8 + $0xc0] ss:$24 sps:$4 sm:$0xff]  }
  0x79   :  { %749 = vmatprep.subr.bf16.mxu0 %v2629_v39  ;;  %705 = vmatpush1.bf16.msra.mxu1 %v2705_v56  ;;  %v2760_v39 = vld [vmem:[#allocation8 + $0xf4] ss:$24 sps:$4 sm:$0xff]   ;;  %v2730_v56 = vld [vmem:[#allocation6 + $0x2e0] ss:$8 sps:$4 sm:$0xff]  }
  0x7a   :  { %706 = vmatprep.subr.bf16.mxu1 %v2709_v57  ;;  %v2739_v57 = vld [vmem:[#allocation6 + $0x2f4] ss:$8 sps:$4 sm:$0xff]  }
  0x7c   :  { %750 = vmatpush1.bf16.msra.mxu0 %v2631_v42  ;;  %v2758_v42 = vld [vmem:[#allocation8 + $0xf0] ss:$24 sps:$4 sm:$0xff]  }
  0x7d   :  { %751 = vmatprep.subr.bf16.mxu0 %v2632_v43  ;;  %707 = vmatpush1.bf16.msra.mxu1 %v2711_v62  ;;  %v2763_v43 = vld [vmem:[#allocation8 + $0x124] ss:$24 sps:$4 sm:$0xff]   ;;  %v2778_v62 = vld [vmem:[#allocation8 + $0x214] ss:$24 sps:$4 sm:$0xff]  }
  0x7e   :  { %708 = vmatprep.subr.bf16.mxu1 %v2715_v1  ;;  %v2776_v1 = vld [vmem:[#allocation8 + $0x210] ss:$24 sps:$4 sm:$0xff]  }
  0x80   :  { %752 = vmatpush1.bf16.msra.mxu0 %v2634_v46  ;;  %v2761_v46 = vld [vmem:[#allocation8 + $0x120] ss:$24 sps:$4 sm:$0xff]  }
  0x81   :  { %753 = vmatprep.subr.bf16.mxu0 %v2635_v47  ;;  %709 = vmatpush1.bf16.msra.mxu1 %v2717_v5  ;;  %v2766_v47 = vld [vmem:[#allocation8 + $0x154] ss:$24 sps:$4 sm:$0xff]   ;;  %v2782_v5 = vld [vmem:[#allocation8 + $0x270] ss:$24 sps:$4 sm:$0xff]  }
  0x82   :  { %710 = vmatprep.subr.bf16.mxu1 %v2721_v6  ;;  %v2787_v6 = vld [vmem:[#allocation8 + $0x2a4] ss:$24 sps:$4 sm:$0xff]  }
  0x84   :  { %754 = vmatpush1.bf16.msra.mxu0 %v2637_v50  ;;  %v2764_v50 = vld [vmem:[#allocation8 + $0x150] ss:$24 sps:$4 sm:$0xff]  }
  0x85   :  { %755 = vmatprep.subr.bf16.mxu0 %v2638_v51  ;;  %711 = vmatpush1.bf16.msra.mxu1 %v2723_v9  ;;  %v2769_v51 = vld [vmem:[#allocation8 + $0x184] ss:$24 sps:$4 sm:$0xff]  }
  0x86   :  { %712 = vmatprep.subr.bf16.mxu1 %v2727_v10  ;;  %v2793_v9 = vld [vmem:[#allocation8 + $0xc] ss:$24 sps:$4 sm:$0xff]  }
  0x88   :  { %756 = vmatpush1.bf16.msra.mxu0 %v2642_v54  ;;  %v2767_v54 = vld [vmem:[#allocation8 + $0x180] ss:$24 sps:$4 sm:$0xff]  }
  0x89   :  { %766 = vmatprep.subr.bf16.mxu0 %v2647_v55  ;;  %713 = vmatpush1.bf16.msra.mxu1 %v2729_v13  ;;  %v2772_v55 = vld [vmem:[#allocation8 + $0x1b4] ss:$24 sps:$4 sm:$0xff]  }
  0x8a   :  { %714 = vmatprep.subr.bf16.mxu1 %v2733_v14 }
  0x8b   :  { %758 = vmatmul.mubr.bf16.vlgmr.msra.gmra.mrb[0].mxu0 %v2276_v59  ;;  %v2775_v59 = vld [vmem:[#allocation8 + $0x1e4] ss:$24 sps:$4 sm:$0xff]  }
  0x8c   :  { %767 = vmatpush1.bf16.msra.mxu0 %v2645_v58  ;;  %798 = vmatprep.mubr.bf16.mxu0 %v2279_v2  ;;  %v2770_v58 = vld [vmem:[#allocation8 + $0x1b0] ss:$24 sps:$4 sm:$0xff]   ;;  %v2781_v2 = vld [vmem:[#allocation8 + $0x244] ss:$24 sps:$4 sm:$0xff]  }
  0x8d   :  { %768 = vmatprep.subr.bf16.mxu0 %v2654_v61  ;;  %715 = vmatpush1.bf16.msra.mxu1 %v2735_v17  ;;  %v2773_v61 = vld [vmem:[#allocation8 + $0x1e0] ss:$24 sps:$4 sm:$0xff]  }
  0x8e   :  { %1387 = vmatprep.subr.bf16.mxu1 %v2745_v19 }
  0x90   :  { %769 = vmatpush1.bf16.msra.mxu0 %v2652_v3  ;;  %717 = vmatmul.mubr.bf16.vlgmr.msra.gmra.mrb[0].mxu1 %v2274_v21  ;;  %v2779_v3 = vld [vmem:[#allocation8 + $0x240] ss:$24 sps:$4 sm:$0xff]  }
  0x91   :  { %770 = vmatprep.subr.bf16.mxu0 %v2660_v4  ;;  %1388 = vmatpush1.bf16.msra.mxu1 %v2743_v22  ;;  %v2784_v4 = vld [vmem:[#allocation8 + $0x274] ss:$24 sps:$4 sm:$0xff]  }
  0x92   :  { %1389 = vmatprep.subr.bf16.mxu1 %v2748_v23  ;;  %v2791_v23 = vld [vmem:[#allocation8 + $0x8] ss:$24 sps:$4 sm:$0xff]  }
  0x94   :  { %771 = vmatpush1.bf16.msra.mxu0 %v2658_v7  ;;  %v2785_v7 = vld [vmem:[#allocation8 + $0x2a0] ss:$24 sps:$4 sm:$0xff]  }
  0x95   :  { %772 = vmatprep.subr.bf16.mxu0 %v2666_v8  ;;  %1390 = vmatpush1.bf16.msra.mxu1 %v2746_v26  ;;  %v2790_v8 = vld [vmem:[#allocation8 + $0x2d4] ss:$24 sps:$4 sm:$0xff]   ;;  %v2887_v26 = vld [vmem:[#allocation9] ss:$8 sps:$4 sm:$0xff]  }
  0x96   :  { %1391 = vmatprep.subr.bf16.mxu1 %v2751_v27  ;;  %v2889_v27 = vld [vmem:[#allocation9 + $0x4] ss:$8 sps:$4 sm:$0xff]  }
  0x98   :  { %773 = vmatpush1.bf16.msra.mxu0 %v2664_v11 }
  0x99   :  { %774 = vmatprep.subr.bf16.mxu0 %v2672_v12  ;;  %1392 = vmatpush1.bf16.msra.mxu1 %v2749_v30  ;;  %v2799_v30 = vld [vmem:[#allocation8 + $0x6c] ss:$24 sps:$4 sm:$0xff]  }
  0x9a   :  { %1393 = vmatprep.subr.bf16.mxu1 %v2754_v31  ;;  %v2890_v31 = vld [vmem:[#allocation9 + $0x10] ss:$8 sps:$4 sm:$0xff]  }
  0x9c   :  { %775 = vmatpush1.bf16.msra.mxu0 %v2670_v15 }
  0x9d   :  { %776 = vmatprep.subr.bf16.mxu0 %v2678_v16  ;;  %1394 = vmatpush1.bf16.msra.mxu1 %v2752_v34  ;;  %v2802_v34 = vld [vmem:[#allocation8 + $0x9c] ss:$24 sps:$4 sm:$0xff]  }
  0x9e   :  { %1395 = vmatprep.subr.bf16.mxu1 %v2757_v35  ;;  %v2893_v35 = vld [vmem:[#allocation9 + $0x20] ss:$8 sps:$4 sm:$0xff]  }
  0xa0   :  { %777 = vmatpush1.bf16.msra.mxu0 %v2676_v18 }
  0xa1   :  { %778 = vmatprep.subr.bf16.mxu0 %v2684_v20  ;;  %1396 = vmatpush1.bf16.msra.mxu1 %v2755_v38  ;;  %v2805_v38 = vld [vmem:[#allocation8 + $0xcc] ss:$24 sps:$4 sm:$0xff]  }
  0xa2   :  { %1397 = vmatprep.subr.bf16.mxu1 %v2760_v39  ;;  %v2896_v39 = vld [vmem:[#allocation9 + $0x30] ss:$8 sps:$4 sm:$0xff]  }
  0xa4   :  { %779 = vmatpush1.bf16.msra.mxu0 %v2682_v24 }
  0xa5   :  { %780 = vmatprep.subr.bf16.mxu0 %v2690_v25  ;;  %1398 = vmatpush1.bf16.msra.mxu1 %v2758_v42  ;;  %v2796_v25 = vld [vmem:[#allocation8 + $0x3c] ss:$24 sps:$4 sm:$0xff]  }
  0xa6   :  { %1399 = vmatprep.subr.bf16.mxu1 %v2763_v43  ;;  %v2808_v42 = vld [vmem:[#allocation8 + $0xfc] ss:$24 sps:$4 sm:$0xff]   ;;  %v2899_v43 = vld [vmem:[#allocation9 + $0x40] ss:$8 sps:$4 sm:$0xff]  }
  0xa8   :  { %781 = vmatpush1.bf16.msra.mxu0 %v2688_v28  ;;  %v2794_v28 = vld [vmem:[#allocation8 + $0x38] ss:$24 sps:$4 sm:$0xff]  }
  0xa9   :  { %782 = vmatprep.subr.bf16.mxu0 %v2696_v29  ;;  %1400 = vmatpush1.bf16.msra.mxu1 %v2761_v46  ;;  %v2892_v29 = vld [vmem:[#allocation9 + $0x14] ss:$8 sps:$4 sm:$0xff]   ;;  %v2811_v46 = vld [vmem:[#allocation8 + $0x12c] ss:$24 sps:$4 sm:$0xff]  }
  0xaa   :  { %1401 = vmatprep.subr.bf16.mxu1 %v2766_v47  ;;  %v2902_v47 = vld [vmem:[#allocation9 + $0x50] ss:$8 sps:$4 sm:$0xff]  }
  0xac   :  { %783 = vmatpush1.bf16.msra.mxu0 %v2694_v32  ;;  %v2895_v32 = vld [vmem:[#allocation9 + $0x24] ss:$8 sps:$4 sm:$0xff]  }
  0xad   :  { %784 = vmatprep.subr.bf16.mxu0 %v2702_v33  ;;  %1402 = vmatpush1.bf16.msra.mxu1 %v2764_v50  ;;  %v2797_v33 = vld [vmem:[#allocation8 + $0x68] ss:$24 sps:$4 sm:$0xff]   ;;  %v2814_v50 = vld [vmem:[#allocation8 + $0x15c] ss:$24 sps:$4 sm:$0xff]  }
  0xae   :  { %1403 = vmatprep.subr.bf16.mxu1 %v2769_v51  ;;  %v2905_v51 = vld [vmem:[#allocation9 + $0x60] ss:$8 sps:$4 sm:$0xff]  }
  0xb0   :  { %785 = vmatpush1.bf16.msra.mxu0 %v2700_v36  ;;  %v2898_v36 = vld [vmem:[#allocation9 + $0x34] ss:$8 sps:$4 sm:$0xff]  }
  0xb1   :  { %786 = vmatprep.subr.bf16.mxu0 %v2708_v37  ;;  %1404 = vmatpush1.bf16.msra.mxu1 %v2767_v54  ;;  %v2800_v37 = vld [vmem:[#allocation8 + $0x98] ss:$24 sps:$4 sm:$0xff]   ;;  %v2817_v54 = vld [vmem:[#allocation8 + $0x18c] ss:$24 sps:$4 sm:$0xff]  }
  0xb2   :  { %1405 = vmatprep.subr.bf16.mxu1 %v2772_v55  ;;  %v2908_v55 = vld [vmem:[#allocation9 + $0x70] ss:$8 sps:$4 sm:$0xff]  }
  0xb4   :  { %787 = vmatpush1.bf16.msra.mxu0 %v2706_v40  ;;  %v2901_v40 = vld [vmem:[#allocation9 + $0x44] ss:$8 sps:$4 sm:$0xff]  }
  0xb5   :  { %788 = vmatprep.subr.bf16.mxu0 %v2714_v41  ;;  %1406 = vmatpush1.bf16.msra.mxu1 %v2770_v58  ;;  %v2803_v41 = vld [vmem:[#allocation8 + $0xc8] ss:$24 sps:$4 sm:$0xff]   ;;  %v2820_v58 = vld [vmem:[#allocation8 + $0x1bc] ss:$24 sps:$4 sm:$0xff]  }
  0xb6   :  { %1407 = vmatprep.subr.bf16.mxu1 %v2775_v59  ;;  %v2911_v59 = vld [vmem:[#allocation9 + $0x80] ss:$8 sps:$4 sm:$0xff]  }
  0xb8   :  { %789 = vmatpush1.bf16.msra.mxu0 %v2712_v44  ;;  %v2904_v44 = vld [vmem:[#allocation9 + $0x54] ss:$8 sps:$4 sm:$0xff]  }
  0xb9   :  { %790 = vmatprep.subr.bf16.mxu0 %v2720_v45  ;;  %1408 = vmatpush1.bf16.msra.mxu1 %v2773_v61  ;;  %v2806_v45 = vld [vmem:[#allocation8 + $0xf8] ss:$24 sps:$4 sm:$0xff]  }
  0xba   :  { %1409 = vmatprep.subr.bf16.mxu1 %v2778_v62  ;;  %v2818_v61 = vld [vmem:[#allocation8 + $0x1b8] ss:$24 sps:$4 sm:$0xff]   ;;  %v2823_v62 = vld [vmem:[#allocation8 + $0x1ec] ss:$24 sps:$4 sm:$0xff]  }
  0xbc   :  { %791 = vmatpush1.bf16.msra.mxu0 %v2718_v48  ;;  %v2907_v48 = vld [vmem:[#allocation9 + $0x64] ss:$8 sps:$4 sm:$0xff]  }
  0xbd   :  { %792 = vmatprep.subr.bf16.mxu0 %v2726_v49  ;;  %1410 = vmatpush1.bf16.msra.mxu1 %v2776_v1  ;;  %v2809_v49 = vld [vmem:[#allocation8 + $0x128] ss:$24 sps:$4 sm:$0xff]   ;;  %v2919_v1 = vld [vmem:[#allocation9 + $0xa4] ss:$8 sps:$4 sm:$0xff]  }
  0xbe   :  { %1411 = vmatprep.subr.bf16.mxu1 %v2781_v2  ;;  %v2821_v2 = vld [vmem:[#allocation8 + $0x1e8] ss:$24 sps:$4 sm:$0xff]  }
  0xc0   :  { %793 = vmatpush1.bf16.msra.mxu0 %v2724_v52  ;;  %v2910_v52 = vld [vmem:[#allocation9 + $0x74] ss:$8 sps:$4 sm:$0xff]  }
  0xc1   :  { %794 = vmatprep.subr.bf16.mxu0 %v2732_v53  ;;  %1412 = vmatpush1.bf16.msra.mxu1 %v2779_v3  ;;  %v2812_v53 = vld [vmem:[#allocation8 + $0x158] ss:$24 sps:$4 sm:$0xff]   ;;  %v2826_v3 = vld [vmem:[#allocation8 + $0x21c] ss:$24 sps:$4 sm:$0xff]  }
  0xc2   :  { %1413 = vmatprep.subr.bf16.mxu1 %v2784_v4  ;;  %v2917_v4 = vld [vmem:[#allocation9 + $0xa0] ss:$8 sps:$4 sm:$0xff]  }
  0xc4   :  { %795 = vmatpush1.bf16.msra.mxu0 %v2730_v56  ;;  %v2913_v56 = vld [vmem:[#allocation9 + $0x84] ss:$8 sps:$4 sm:$0xff]  }
  0xc5   :  { %796 = vmatprep.subr.bf16.mxu0 %v2739_v57  ;;  %1414 = vmatpush1.bf16.msra.mxu1 %v2782_v5  ;;  %v2815_v57 = vld [vmem:[#allocation8 + $0x188] ss:$24 sps:$4 sm:$0xff]   ;;  %v2922_v5 = vld [vmem:[#allocation9 + $0xb4] ss:$8 sps:$4 sm:$0xff]  }
  0xc6   :  { %1415 = vmatprep.subr.bf16.mxu1 %v2787_v6  ;;  %v2824_v6 = vld [vmem:[#allocation8 + $0x218] ss:$24 sps:$4 sm:$0xff]  }
  0xc8   :  { %797 = vmatpush1.bf16.msra.mxu0 %v2737_v60  ;;  %v2916_v60 = vld [vmem:[#allocation9 + $0x94] ss:$8 sps:$4 sm:$0xff]  }
  0xc9   :  { %1416 = vmatpush1.bf16.msra.mxu1 %v2785_v7  ;;  %2130 = vmatprep.subr.bf16.mxu0 %v2889_v27  ;;  %v2829_v7 = vld [vmem:[#allocation8 + $0x24c] ss:$24 sps:$4 sm:$0xff]  }
  0xca   :  { %1417 = vmatprep.subr.bf16.mxu1 %v2790_v8  ;;  %v2920_v8 = vld [vmem:[#allocation9 + $0xb0] ss:$8 sps:$4 sm:$0xff]   ;;  %v2853_v27 = vld [vmem:[#allocation8 + $0xd4] ss:$24 sps:$4 sm:$0xff]  }
  0xcb   :  { %799 = vmatmul.mubr.bf16.vlgmr.msra.gmra.mrb[0].mxu0 %v2278_v63  ;;  %v2914_v63 = vld [vmem:[#allocation9 + $0x90] ss:$8 sps:$4 sm:$0xff]  }
  0xcc   :  { %2131 = vmatpush1.bf16.msra.mxu0 %v2887_v26  ;;  %v2848_v26 = vld [vmem:[#allocation8 + $0xa0] ss:$24 sps:$4 sm:$0xff]  }
  0xcd   :  { %1418 = vmatpush1.bf16.msra.mxu1 %v2788_v0  ;;  %2132 = vmatprep.subr.bf16.mxu0 %v2892_v29  ;;  %v2925_v0 = vld [vmem:[#allocation9 + $0xc4] ss:$8 sps:$4 sm:$0xff]  }
  0xce   :  { %1428 = vmatprep.subr.bf16.mxu1 %v2793_v9  ;;  %v2827_v9 = vld [vmem:[#allocation8 + $0x248] ss:$24 sps:$4 sm:$0xff]   ;;  %v2856_v29 = vld [vmem:[#allocation8 + $0x104] ss:$24 sps:$4 sm:$0xff]  }
  0xd0   :  { %2133 = vmatpush1.bf16.msra.mxu0 %v2890_v31  ;;  %v2859_v31 = vld [vmem:[#allocation8 + $0x134] ss:$24 sps:$4 sm:$0xff]  }
  0xd1   :  { %2134 = vmatprep.subr.bf16.mxu0 %v2895_v32  ;;  %v2926_v32 = vld [vmem:[#allocation9 + $0xd0] ss:$8 sps:$4 sm:$0xff]  }
  0xd4   :  { %2135 = vmatpush1.bf16.msra.mxu0 %v2893_v35  ;;  %v2931_v35 = vld [vmem:[#allocation9 + $0xe4] ss:$8 sps:$4 sm:$0xff]  }
  0xd5   :  { %2136 = vmatprep.subr.bf16.mxu0 %v2898_v36  ;;  %v2929_v36 = vld [vmem:[#allocation9 + $0xe0] ss:$8 sps:$4 sm:$0xff]  }
  0xd8   :  { %2137 = vmatpush1.bf16.msra.mxu0 %v2896_v39  ;;  %v2934_v39 = vld [vmem:[#allocation9 + $0xf4] ss:$8 sps:$4 sm:$0xff]  }
  0xd9   :  { %2138 = vmatprep.subr.bf16.mxu0 %v2901_v40  ;;  %v2932_v40 = vld [vmem:[#allocation9 + $0xf0] ss:$8 sps:$4 sm:$0xff]  }
  0xdc   :  { %2139 = vmatpush1.bf16.msra.mxu0 %v2899_v43  ;;  %v2937_v43 = vld [vmem:[#allocation9 + $0x104] ss:$8 sps:$4 sm:$0xff]  }
  0xdd   :  { %2140 = vmatprep.subr.bf16.mxu0 %v2904_v44  ;;  %v2866_v44 = vld [vmem:[#allocation8 + $0x1c0] ss:$24 sps:$4 sm:$0xff]  }
  0xe0   :  { %2141 = vmatpush1.bf16.msra.mxu0 %v2902_v47  ;;  %v2874_v47 = vld [vmem:[#allocation8 + $0x224] ss:$24 sps:$4 sm:$0xff]  }
  0xe1   :  { %2142 = vmatprep.subr.bf16.mxu0 %v2907_v48  ;;  %v2872_v48 = vld [vmem:[#allocation8 + $0x220] ss:$24 sps:$4 sm:$0xff]  }
  0xe4   :  { %2143 = vmatpush1.bf16.msra.mxu0 %v2905_v51  ;;  %v2880_v51 = vld [vmem:[#allocation8 + $0x284] ss:$24 sps:$4 sm:$0xff]  }
  0xe5   :  { %2144 = vmatprep.subr.bf16.mxu0 %v2910_v52  ;;  %v2878_v52 = vld [vmem:[#allocation8 + $0x280] ss:$24 sps:$4 sm:$0xff]  }
  0xe8   :  { %2145 = vmatpush1.bf16.msra.mxu0 %v2908_v55  ;;  %v2886_v55 = vld [vmem:[#allocation8 + $0x2e4] ss:$24 sps:$4 sm:$0xff]  }
  0xe9   :  { %2146 = vmatprep.subr.bf16.mxu0 %v2913_v56  ;;  %v2884_v56 = vld [vmem:[#allocation8 + $0x2e0] ss:$24 sps:$4 sm:$0xff]  }
  0xec   :  { %2147 = vmatpush1.bf16.msra.mxu0 %v2911_v59 }
  0xed   :  { %2148 = vmatprep.subr.bf16.mxu0 %v2916_v60 }
  0xf0   :  { %2149 = vmatpush1.bf16.msra.mxu0 %v2914_v63  ;;  %v3275_v63 = vstv %s3303_s5 }
  0xf1   :  { %2150 = vmatprep.subr.bf16.mxu0 %v2919_v1 }
  0xf4   :  { %2151 = vmatpush1.bf16.msra.mxu0 %v2917_v4 }
  0xf5   :  { %2152 = vmatprep.subr.bf16.mxu0 %v2922_v5 }
  0xf8   :  { %2153 = vmatpush1.bf16.msra.mxu0 %v2920_v8 }
  0xf9   :  { %2154 = vmatprep.subr.bf16.mxu0 %v2925_v0 }
 0x163   :  { %v718_v10 = vpop.f32.mrb[0].mxu1 }
 0x164   :  { %v720_v11 = vpop.f32.mrb[1].mxu1 }
 0x165   :  { %v722_v12 = vpop.f32.mrb[2].mxu1 }
 0x166   :  { %v723_v13 = vpop.f32.mrb[3].mxu1  ;;  %v2830_v12 = vld [vmem:[#allocation8 + $0x278] ss:$24 sps:$4 sm:$0xff]  }
 0x167   :  { %v2835_v13 = vld [vmem:[#allocation8 + $0x2ac] ss:$24 sps:$4 sm:$0xff]  }
 0x19e   :  { %v800_v14 = vpop.f32.mrb[0].mxu0 }
 0x19f   :  { %v2568_v15 = vadd.f32 %v800_v14, %v718_v10  ;;  %v802_v16 = vpop.f32.mrb[1].mxu0  ;;  %v2832_v10 = vld [vmem:[#allocation8 + $0x27c] ss:$24 sps:$4 sm:$0xff]   ;;  %v2833_v14 = vld [vmem:[#allocation8 + $0x2a8] ss:$24 sps:$4 sm:$0xff]  }
 0x1a0   :  { %v2569_v17 = vadd.f32 %v802_v16, %v720_v11  ;;  %v804_v18 = vpop.f32.mrb[2].mxu0  ;;  %v2923_v11 = vld [vmem:[#allocation9 + $0xc0] ss:$8 sps:$4 sm:$0xff]   ;;  %v2836_v16 = vld [vmem:[#allocation8 + $0x2d8] ss:$24 sps:$4 sm:$0xff]  }
 0x1a1   :  { %v807_v19 = vmax.f32 %v2568_v15, 0.0  ;;  %v805_v20 = vpop.f32.mrb[3].mxu0  ;;  %2155 = vmatpush1.bf16.msra.mxu0 %v2923_v11  ;;  %v2838_v15 = vld [vmem:[#allocation8 + $0x2dc] ss:$24 sps:$4 sm:$0xff]   ;;  %v2839_v18 = vld [vmem:[#allocation8 + $0x10] ss:$24 sps:$4 sm:$0xff]  }
 0x1a2   :  { %v808_v21 = vmax.f32 %v2569_v17, 0.0  ;;  %v2841_v17 = vld [vmem:[#allocation8 + $0x14] ss:$24 sps:$4 sm:$0xff]   ;;  %v2842_v20 = vld [vmem:[#allocation8 + $0x40] ss:$24 sps:$4 sm:$0xff]  }
 0x1a3   :  { %v3264_v24 = vpack.c.bf16 %v807_v19, %v807_v19  ;;  %v2844_v19 = vld [vmem:[#allocation8 + $0x44] ss:$24 sps:$4 sm:$0xff]  }
 0x1a4   :  { %v3262_v22 = vpack.c.bf16 %v808_v21, %v808_v21  ;;  %v2847_v21 = vld [vmem:[#allocation8 + $0x74] ss:$24 sps:$4 sm:$0xff]  }
 0x1a5   :  { %v2940_v11 = vld [vmem:[#allocation9 + $0x114] ss:$8 sps:$4 sm:$0xff]  }
 0x1a6   :  { %1419 = vmatprep.mubr.bf16.mxu1 %v3262_v22 }
 0x1a7   :  { %1420 = vmatmul.mubr.bf16.vlgmr.msra.gmra.mrb[4].mxu1 %v3264_v24 }
 0x1a8   :  { %1429 = vmatpush1.bf16.msra.mxu1 %v2791_v23  ;;  %1460 = vmatprep.mubr.bf16.mxu1 %v3262_v22  ;;  %v2845_v23 = vld [vmem:[#allocation8 + $0x70] ss:$24 sps:$4 sm:$0xff]  }
 0x1a9   :  { %1430 = vmatprep.subr.bf16.mxu1 %v2796_v25  ;;  %v2850_v25 = vld [vmem:[#allocation8 + $0xa4] ss:$24 sps:$4 sm:$0xff]  }
 0x1ac   :  { %1431 = vmatpush1.bf16.msra.mxu1 %v2794_v28  ;;  %v2851_v28 = vld [vmem:[#allocation8 + $0xd0] ss:$24 sps:$4 sm:$0xff]  }
 0x1ad   :  { %1432 = vmatprep.subr.bf16.mxu1 %v2799_v30  ;;  %v2854_v30 = vld [vmem:[#allocation8 + $0x100] ss:$24 sps:$4 sm:$0xff]  }
 0x1b0   :  { %1433 = vmatpush1.bf16.msra.mxu1 %v2797_v33  ;;  %v2857_v33 = vld [vmem:[#allocation8 + $0x130] ss:$24 sps:$4 sm:$0xff]  }
 0x1b1   :  { %1434 = vmatprep.subr.bf16.mxu1 %v2802_v34  ;;  %v2862_v34 = vld [vmem:[#allocation8 + $0x164] ss:$24 sps:$4 sm:$0xff]  }
 0x1b4   :  { %1435 = vmatpush1.bf16.msra.mxu1 %v2800_v37  ;;  %v2860_v37 = vld [vmem:[#allocation8 + $0x160] ss:$24 sps:$4 sm:$0xff]  }
 0x1b5   :  { %1436 = vmatprep.subr.bf16.mxu1 %v2805_v38  ;;  %v2865_v38 = vld [vmem:[#allocation8 + $0x194] ss:$24 sps:$4 sm:$0xff]  }
 0x1b8   :  { %1437 = vmatpush1.bf16.msra.mxu1 %v2803_v41  ;;  %v2863_v41 = vld [vmem:[#allocation8 + $0x190] ss:$24 sps:$4 sm:$0xff]  }
 0x1b9   :  { %1438 = vmatprep.subr.bf16.mxu1 %v2808_v42  ;;  %v2868_v42 = vld [vmem:[#allocation8 + $0x1c4] ss:$24 sps:$4 sm:$0xff]  }
 0x1bc   :  { %1439 = vmatpush1.bf16.msra.mxu1 %v2806_v45  ;;  %v2871_v45 = vld [vmem:[#allocation8 + $0x1f4] ss:$24 sps:$4 sm:$0xff]  }
 0x1bd   :  { %1440 = vmatprep.subr.bf16.mxu1 %v2811_v46  ;;  %v2869_v46 = vld [vmem:[#allocation8 + $0x1f0] ss:$24 sps:$4 sm:$0xff]  }
 0x1c0   :  { %1441 = vmatpush1.bf16.msra.mxu1 %v2809_v49  ;;  %v2877_v49 = vld [vmem:[#allocation8 + $0x254] ss:$24 sps:$4 sm:$0xff]  }
 0x1c1   :  { %1442 = vmatprep.subr.bf16.mxu1 %v2814_v50  ;;  %v2875_v50 = vld [vmem:[#allocation8 + $0x250] ss:$24 sps:$4 sm:$0xff]  }
 0x1c4   :  { %1443 = vmatpush1.bf16.msra.mxu1 %v2812_v53  ;;  %v2883_v53 = vld [vmem:[#allocation8 + $0x2b4] ss:$24 sps:$4 sm:$0xff]  }
 0x1c5   :  { %1444 = vmatprep.subr.bf16.mxu1 %v2817_v54  ;;  %v2881_v54 = vld [vmem:[#allocation8 + $0x2b0] ss:$24 sps:$4 sm:$0xff]  }
 0x1c8   :  { %1445 = vmatpush1.bf16.msra.mxu1 %v2815_v57  ;;  %v3031_v57 = vld [vmem:[#allocation3] sm:$0xff] }
 0x1c9   :  { %1446 = vmatprep.subr.bf16.mxu1 %v2820_v58  ;;  %v81_v58 = vunpack.c.l.bf16 %v3031_v57  ;;  %v82_v60 = vunpack.c.h.bf16 %v3031_v57 }
 0x1cc   :  { %1447 = vmatpush1.bf16.msra.mxu1 %v2818_v61 }
 0x1cd   :  { %1448 = vmatprep.subr.bf16.mxu1 %v2823_v62 }
 0x1d0   :  { %1449 = vmatpush1.bf16.msra.mxu1 %v2821_v2 }
 0x1d1   :  { %1450 = vmatprep.subr.bf16.mxu1 %v2826_v3 }
 0x1d4   :  { %1451 = vmatpush1.bf16.msra.mxu1 %v2824_v6 }
 0x1d5   :  { %1452 = vmatprep.subr.bf16.mxu1 %v2829_v7 }
 0x1d8   :  { %1453 = vmatpush1.bf16.msra.mxu1 %v2827_v9  ;;  %v2935_v9 = vld [vmem:[#allocation9 + $0x100] ss:$8 sps:$4 sm:$0xff]  }
 0x1d9   :  { %1454 = vmatprep.subr.bf16.mxu1 %v2832_v10 }
 0x1dc   :  { %1455 = vmatpush1.bf16.msra.mxu1 %v2830_v12  ;;  %v2938_v12 = vld [vmem:[#allocation9 + $0x110] ss:$8 sps:$4 sm:$0xff]  }
 0x1dd   :  { %1456 = vmatprep.subr.bf16.mxu1 %v2835_v13  ;;  %v2943_v13 = vld [vmem:[#allocation9 + $0x124] ss:$8 sps:$4 sm:$0xff]  }
 0x1e0   :  { %1457 = vmatpush1.bf16.msra.mxu1 %v2833_v14  ;;  %v2941_v14 = vld [vmem:[#allocation9 + $0x120] ss:$8 sps:$4 sm:$0xff]  }
 0x1e1   :  { %1458 = vmatprep.subr.bf16.mxu1 %v2838_v15  ;;  %v2946_v15 = vld [vmem:[#allocation9 + $0x134] ss:$8 sps:$4 sm:$0xff]  }
 0x1e4   :  { %1459 = vmatpush1.bf16.msra.mxu1 %v2836_v16  ;;  %v2944_v16 = vld [vmem:[#allocation9 + $0x130] ss:$8 sps:$4 sm:$0xff]  }
 0x1e5   :  { %1469 = vmatprep.subr.bf16.mxu1 %v2841_v17  ;;  %v2949_v17 = vld [vmem:[#allocation9 + $0x144] ss:$8 sps:$4 sm:$0xff]  }
 0x1e7   :  { %1461 = vmatmul.mubr.bf16.vlgmr.msra.gmra.mrb[8].mxu1 %v3264_v24 }
 0x1e8   :  { %1470 = vmatpush1.bf16.msra.mxu1 %v2839_v18  ;;  %1501 = vmatprep.mubr.bf16.mxu1 %v3262_v22  ;;  %v2928_v22 = vld [vmem:[#allocation9 + $0xd4] ss:$8 sps:$4 sm:$0xff]   ;;  %v2947_v18 = vld [vmem:[#allocation9 + $0x140] ss:$8 sps:$4 sm:$0xff]  }
 0x1e9   :  { %1471 = vmatprep.subr.bf16.mxu1 %v2844_v19  ;;  %2156 = vmatprep.subr.bf16.mxu0 %v2928_v22  ;;  %v2952_v19 = vld [vmem:[#allocation9 + $0x154] ss:$8 sps:$4 sm:$0xff]   ;;  %v2965_v22 = vld [vmem:[#allocation9 + $0x1a0] ss:$8 sps:$4 sm:$0xff]  }
 0x1ea   :  { %2157 = vmatpush1.bf16.msra.mxu0 %v2926_v32  ;;  %v2970_v32 = vld [vmem:[#allocation9 + $0x1b4] ss:$8 sps:$4 sm:$0xff]  }
 0x1eb   :  { %2158 = vmatprep.subr.bf16.mxu0 %v2931_v35  ;;  %v2971_v35 = vld [vmem:[#allocation9 + $0x1c0] ss:$8 sps:$4 sm:$0xff]  }
 0x1ec   :  { %1472 = vmatpush1.bf16.msra.mxu1 %v2842_v20  ;;  %v2950_v20 = vld [vmem:[#allocation9 + $0x150] ss:$8 sps:$4 sm:$0xff]  }
 0x1ed   :  { %1473 = vmatprep.subr.bf16.mxu1 %v2847_v21  ;;  %v2955_v21 = vld [vmem:[#allocation9 + $0x164] ss:$8 sps:$4 sm:$0xff]  }
 0x1ee   :  { %2159 = vmatpush1.bf16.msra.mxu0 %v2929_v36  ;;  %v2976_v36 = vld [vmem:[#allocation9 + $0x1d4] ss:$8 sps:$4 sm:$0xff]  }
 0x1ef   :  { %2160 = vmatprep.subr.bf16.mxu0 %v2934_v39 }
 0x1f0   :  { %1474 = vmatpush1.bf16.msra.mxu1 %v2845_v23  ;;  %v2953_v23 = vld [vmem:[#allocation9 + $0x160] ss:$8 sps:$4 sm:$0xff]  }
 0x1f1   :  { %1475 = vmatprep.subr.bf16.mxu1 %v2850_v25  ;;  %v2958_v25 = vld [vmem:[#allocation9 + $0x174] ss:$8 sps:$4 sm:$0xff]  }
 0x1f2   :  { %2161 = vmatpush1.bf16.msra.mxu0 %v2932_v40  ;;  %v2979_v40 = vld [vmem:[#allocation9 + $0x1e4] ss:$8 sps:$4 sm:$0xff]  }
 0x1f3   :  { %2171 = vmatprep.subr.bf16.mxu0 %v2937_v43 }
 0x1f4   :  { %1476 = vmatpush1.bf16.msra.mxu1 %v2848_v26  ;;  %v2956_v26 = vld [vmem:[#allocation9 + $0x170] ss:$8 sps:$4 sm:$0xff]  }
 0x1f5   :  { %1477 = vmatprep.subr.bf16.mxu1 %v2853_v27  ;;  %v2961_v27 = vld [vmem:[#allocation9 + $0x184] ss:$8 sps:$4 sm:$0xff]  }
 0x1f8   :  { %1478 = vmatpush1.bf16.msra.mxu1 %v2851_v28  ;;  %v2959_v28 = vld [vmem:[#allocation9 + $0x180] ss:$8 sps:$4 sm:$0xff]  }
 0x1f9   :  { %1479 = vmatprep.subr.bf16.mxu1 %v2856_v29  ;;  %v2964_v29 = vld [vmem:[#allocation9 + $0x194] ss:$8 sps:$4 sm:$0xff]  }
 0x1fc   :  { %1480 = vmatpush1.bf16.msra.mxu1 %v2854_v30  ;;  %v2962_v30 = vld [vmem:[#allocation9 + $0x190] ss:$8 sps:$4 sm:$0xff]  }
 0x1fd   :  { %1481 = vmatprep.subr.bf16.mxu1 %v2859_v31  ;;  %v2967_v31 = vld [vmem:[#allocation9 + $0x1a4] ss:$8 sps:$4 sm:$0xff]  }
 0x200   :  { %1482 = vmatpush1.bf16.msra.mxu1 %v2857_v33  ;;  %v2968_v33 = vld [vmem:[#allocation9 + $0x1b0] ss:$8 sps:$4 sm:$0xff]  }
 0x201   :  { %1483 = vmatprep.subr.bf16.mxu1 %v2862_v34  ;;  %v2973_v34 = vld [vmem:[#allocation9 + $0x1c4] ss:$8 sps:$4 sm:$0xff]  }
 0x204   :  { %1484 = vmatpush1.bf16.msra.mxu1 %v2860_v37  ;;  %v2974_v37 = vld [vmem:[#allocation9 + $0x1d0] ss:$8 sps:$4 sm:$0xff]  }
 0x205   :  { %1485 = vmatprep.subr.bf16.mxu1 %v2865_v38  ;;  %v3032_v38 = vld [vmem:[#allocation3 + $0x8] sm:$0xff] }
 0x206   :  { %v83_v39 = vunpack.c.l.bf16 %v3032_v38 }
 0x208   :  { %1486 = vmatpush1.bf16.msra.mxu1 %v2863_v41 }
 0x209   :  { %1487 = vmatprep.subr.bf16.mxu1 %v2868_v42  ;;  %v84_v42 = vunpack.c.h.bf16 %v3032_v38 }
 0x20c   :  { %1488 = vmatpush1.bf16.msra.mxu1 %v2866_v44 }
 0x20d   :  { %1489 = vmatprep.subr.bf16.mxu1 %v2871_v45 }
 0x210   :  { %1490 = vmatpush1.bf16.msra.mxu1 %v2869_v46 }
 0x211   :  { %1491 = vmatprep.subr.bf16.mxu1 %v2874_v47  ;;  %v2977_v47 = vld [vmem:[#allocation9 + $0x1e0] ss:$8 sps:$4 sm:$0xff]  }
 0x214   :  { %1492 = vmatpush1.bf16.msra.mxu1 %v2872_v48 }
 0x215   :  { %1493 = vmatprep.subr.bf16.mxu1 %v2877_v49 }
 0x218   :  { %1494 = vmatpush1.bf16.msra.mxu1 %v2875_v50  ;;  %v2982_v50 = vld [vmem:[#allocation9 + $0x1f4] ss:$8 sps:$4 sm:$0xff]  }
 0x219   :  { %1495 = vmatprep.subr.bf16.mxu1 %v2880_v51 }
 0x21c   :  { %1496 = vmatpush1.bf16.msra.mxu1 %v2878_v52 }
 0x21d   :  { %1497 = vmatprep.subr.bf16.mxu1 %v2883_v53 }
 0x220   :  { %1498 = vmatpush1.bf16.msra.mxu1 %v2881_v54  ;;  %v2980_v54 = vld [vmem:[#allocation9 + $0x1f0] ss:$8 sps:$4 sm:$0xff]  }
 0x221   :  { %1499 = vmatprep.subr.bf16.mxu1 %v2886_v55 }
 0x224   :  { %1500 = vmatpush1.bf16.msra.mxu1 %v2884_v56  ;;  %v2985_v56 = vld [vmem:[#allocation9 + $0x204] ss:$8 sps:$4 sm:$0xff]  }
 0x227   :  { %1502 = vmatmul.mubr.bf16.vlgmr.msra.gmra.mrb[12].mxu1 %v3264_v24 }
 0x27a   :  { %v1421_v59 = vpop.f32.mrb[4].mxu1 }
 0x27b   :  { %v1510_v61 = vmax.f32 %v1421_v59, 0.0  ;;  %v1423_v62 = vpop.f32.mrb[5].mxu1  ;;  %v2983_v59 = vld [vmem:[#allocation9 + $0x200] ss:$8 sps:$4 sm:$0xff]  }
 0x27c   :  { %v1511_v1 = vmax.f32 %v1423_v62, 0.0  ;;  %v1425_v2 = vpop.f32.mrb[6].mxu1  ;;  %v2986_v62 = vld [vmem:[#allocation9 + $0x210] ss:$8 sps:$4 sm:$0xff]  }
 0x27d   :  { %v1517_v3 = vsub.f32 %v1510_v61, %v81_v58  ;;  %v1426_v4 = vpop.f32.mrb[7].mxu1  ;;  %v2988_v61 = vld [vmem:[#allocation9 + $0x214] ss:$8 sps:$4 sm:$0xff]   ;;  %v2989_v2 = vld [vmem:[#allocation9 + $0x220] ss:$8 sps:$4 sm:$0xff]  }
 0x27e   :  { %v1518_v5 = vsub.f32 %v1511_v1, %v82_v60  ;;  %v2991_v1 = vld [vmem:[#allocation9 + $0x224] ss:$8 sps:$4 sm:$0xff]   ;;  %v2992_v4 = vld [vmem:[#allocation9 + $0x230] ss:$8 sps:$4 sm:$0xff]  }
 0x27f   :  { %v1524_v6 = vmul.f32 %v3275_v63, %v1517_v3  ;;  %v2994_v3 = vld [vmem:[#allocation9 + $0x234] ss:$8 sps:$4 sm:$0xff]  }
 0x280   :  { %v1525_v24 = vmul.f32 %v3275_v63, %v1518_v5  ;;  %v2997_v5 = vld [vmem:[#allocation9 + $0x244] ss:$8 sps:$4 sm:$0xff]  }
 0x281   :  { %v1530_v7 = vadd.f32 %v1524_v6, %v81_v58  ;;  %v2995_v6 = vld [vmem:[#allocation9 + $0x240] ss:$8 sps:$4 sm:$0xff]  }
 0x282   :  { %v1531_v8 = vadd.f32 %v1525_v24, %v82_v60  ;;  %v3000_v24 = vld [vmem:[#allocation9 + $0x254] ss:$8 sps:$4 sm:$0xff]  }
 0x283   :  { %v1536_v10 = vpack.c.bf16 %v1530_v7, %v1530_v7  ;;  %v2998_v7 = vld [vmem:[#allocation9 + $0x250] ss:$8 sps:$4 sm:$0xff]  }
 0x284   :  { %v1537_v0 = vpack.c.bf16 %v1531_v8, %v1531_v8  ;;  %v3003_v8 = vld [vmem:[#allocation9 + $0x264] ss:$8 sps:$4 sm:$0xff]  }
 0x286   :  { %2162 = vmatprep.mubr.bf16.mxu0 %v1537_v0  ;;  %v3001_v0 = vld [vmem:[#allocation9 + $0x260] ss:$8 sps:$4 sm:$0xff]  }
 0x287   :  { %2163 = vmatmul.mubr.bf16.vlgmr.msra.gmra.mrb[4].mxu0 %v1536_v10  ;;  %v3004_v10 = vld [vmem:[#allocation9 + $0x270] ss:$8 sps:$4 sm:$0xff]  }
 0x288   :  { %2172 = vmatpush1.bf16.msra.mxu0 %v2935_v9  ;;  %v3006_v9 = vld [vmem:[#allocation9 + $0x274] ss:$8 sps:$4 sm:$0xff]  }
 0x289   :  { %2173 = vmatprep.subr.bf16.mxu0 %v2940_v11  ;;  %v3009_v11 = vld [vmem:[#allocation9 + $0x284] ss:$8 sps:$4 sm:$0xff]  }
 0x28c   :  { %2174 = vmatpush1.bf16.msra.mxu0 %v2938_v12  ;;  %v3007_v12 = vld [vmem:[#allocation9 + $0x280] ss:$8 sps:$4 sm:$0xff]  }
 0x28d   :  { %2175 = vmatprep.subr.bf16.mxu0 %v2943_v13  ;;  %v3012_v13 = vld [vmem:[#allocation9 + $0x294] ss:$8 sps:$4 sm:$0xff]  }
 0x290   :  { %2176 = vmatpush1.bf16.msra.mxu0 %v2941_v14  ;;  %v3010_v14 = vld [vmem:[#allocation9 + $0x290] ss:$8 sps:$4 sm:$0xff]  }
 0x291   :  { %2177 = vmatprep.subr.bf16.mxu0 %v2946_v15  ;;  %v3015_v15 = vld [vmem:[#allocation9 + $0x2a4] ss:$8 sps:$4 sm:$0xff]  }
 0x294   :  { %2178 = vmatpush1.bf16.msra.mxu0 %v2944_v16  ;;  %v3013_v16 = vld [vmem:[#allocation9 + $0x2a0] ss:$8 sps:$4 sm:$0xff]  }
 0x295   :  { %2179 = vmatprep.subr.bf16.mxu0 %v2949_v17  ;;  %v3018_v17 = vld [vmem:[#allocation9 + $0x2b4] ss:$8 sps:$4 sm:$0xff]  }
 0x298   :  { %2180 = vmatpush1.bf16.msra.mxu0 %v2947_v18  ;;  %v3016_v18 = vld [vmem:[#allocation9 + $0x2b0] ss:$8 sps:$4 sm:$0xff]  }
 0x299   :  { %2181 = vmatprep.subr.bf16.mxu0 %v2952_v19  ;;  %v3021_v19 = vld [vmem:[#allocation9 + $0x2c4] ss:$8 sps:$4 sm:$0xff]  }
 0x29c   :  { %2182 = vmatpush1.bf16.msra.mxu0 %v2950_v20  ;;  %v3019_v20 = vld [vmem:[#allocation9 + $0x2c0] ss:$8 sps:$4 sm:$0xff]  }
 0x29d   :  { %2183 = vmatprep.subr.bf16.mxu0 %v2955_v21  ;;  %v3024_v21 = vld [vmem:[#allocation9 + $0x2d4] ss:$8 sps:$4 sm:$0xff]  }
 0x2a0   :  { %2184 = vmatpush1.bf16.msra.mxu0 %v2953_v23  ;;  %v3022_v23 = vld [vmem:[#allocation9 + $0x2d0] ss:$8 sps:$4 sm:$0xff]  }
 0x2a1   :  { %2185 = vmatprep.subr.bf16.mxu0 %v2958_v25  ;;  %v3033_v25 = vld [vmem:[#allocation3 + $0x10] sm:$0xff] }
 0x2a4   :  { %2186 = vmatpush1.bf16.msra.mxu0 %v2956_v26  ;;  %v85_v26 = vunpack.c.l.bf16 %v3033_v25 }
 0x2a5   :  { %2187 = vmatprep.subr.bf16.mxu0 %v2961_v27  ;;  %v3027_v27 = vld [vmem:[#allocation9 + $0x2e4] ss:$8 sps:$4 sm:$0xff]  }
 0x2a8   :  { %2188 = vmatpush1.bf16.msra.mxu0 %v2959_v28 }
 0x2a9   :  { %2189 = vmatprep.subr.bf16.mxu0 %v2964_v29  ;;  %v86_v29 = vunpack.c.h.bf16 %v3033_v25 }
 0x2ac   :  { %2190 = vmatpush1.bf16.msra.mxu0 %v2962_v30 }
 0x2ad   :  { %2191 = vmatprep.subr.bf16.mxu0 %v2967_v31 }
 0x2b0   :  { %2192 = vmatpush1.bf16.msra.mxu0 %v2965_v22 }
 0x2b1   :  { %2193 = vmatprep.subr.bf16.mxu0 %v2970_v32 }
 0x2b4   :  { %2194 = vmatpush1.bf16.msra.mxu0 %v2968_v33  ;;  %v3025_v33 = vld [vmem:[#allocation9 + $0x2e0] ss:$8 sps:$4 sm:$0xff]  }
 0x2b5   :  { %2195 = vmatprep.subr.bf16.mxu0 %v2973_v34 }
 0x2b8   :  { %2196 = vmatpush1.bf16.msra.mxu0 %v2971_v35 }
 0x2b9   :  { %2197 = vmatprep.subr.bf16.mxu0 %v2976_v36  ;;  %v3030_v36 = vld [vmem:[#allocation9 + $0x2f4] ss:$8 sps:$4 sm:$0xff]  }
 0x2ba   :  { %v1462_v41 = vpop.f32.mrb[8].mxu1 }
 0x2bb   :  { %v1512_v43 = vmax.f32 %v1462_v41, 0.0  ;;  %v1464_v44 = vpop.f32.mrb[9].mxu1 }
 0x2bc   :  { %v1513_v45 = vmax.f32 %v1464_v44, 0.0  ;;  %v1466_v46 = vpop.f32.mrb[10].mxu1  ;;  %2198 = vmatpush1.bf16.msra.mxu0 %v2974_v37 }
 0x2bd   :  { %v1519_v48 = vsub.f32 %v1512_v43, %v83_v39  ;;  %v1467_v49 = vpop.f32.mrb[11].mxu1  ;;  %2199 = vmatprep.subr.bf16.mxu0 %v2979_v40  ;;  %v3028_v40 = vld [vmem:[#allocation9 + $0x2f0] ss:$8 sps:$4 sm:$0xff]  }
 0x2be   :  { %v1520_v51 = vsub.f32 %v1513_v45, %v84_v42  ;;  %v1640_v45 = vlaneseq }
 0x2bf   :  { %v1526_v52 = vmul.f32 %v3275_v63, %v1519_v48  ;;  %v1638_v48 = vld [vmem:[%s3302_s4] sm:$0x3] }
 0x2c0   :  { %v1527_v53 = vmul.f32 %v3275_v63, %v1520_v51  ;;  %2200 = vmatpush1.bf16.msra.mxu0 %v2977_v47  ;;  %v1641_v46 = vshrl.u32 %v1640_v45, 7 }
 0x2c1   :  { %v1532_v55 = vadd.f32 %v1526_v52, %v83_v39  ;;  %2201 = vmatprep.subr.bf16.mxu0 %v2982_v50 }
 0x2c2   :  { %v1533_v57 = vadd.f32 %v1527_v53, %v84_v42  ;;  %v1642_v47 = vsub.s32 0, %v1641_v46  ;;  %v1646_v49 = vsub.s32 1, %v1641_v46 }
 0x2c3   :  { %v1538_v60 = vpack.c.bf16 %v1532_v55, %v1532_v55 }
 0x2c4   :  { %2202 = vmatpush1.bf16.msra.mxu0 %v2980_v54  ;;  %v1539_v58 = vpack.c.bf16 %v1533_v57, %v1533_v57  ;;  %v1643_v50 = vrot.slane %v1638_v48, %v1642_v47 }
 0x2c5   :  { %2212 = vmatprep.subr.bf16.mxu0 %v2985_v56 }
 0x2c6   :  { %2203 = vmatprep.mubr.bf16.mxu0 %v1539_v58 }
 0x2c7   :  { %2204 = vmatmul.mubr.bf16.vlgmr.msra.gmra.mrb[4].mxu0 %v1538_v60 }
 0x2c8   :  { %2213 = vmatpush1.bf16.msra.mxu0 %v2983_v59 }
 0x2c9   :  { %2214 = vmatprep.subr.bf16.mxu0 %v2988_v61 }
 0x2cc   :  { %2215 = vmatpush1.bf16.msra.mxu0 %v2986_v62 }
 0x2cd   :  { %2216 = vmatprep.subr.bf16.mxu0 %v2991_v1 }
 0x2d0   :  { %2217 = vmatpush1.bf16.msra.mxu0 %v2989_v2 }
 0x2d1   :  { %2218 = vmatprep.subr.bf16.mxu0 %v2994_v3 }
 0x2d4   :  { %2219 = vmatpush1.bf16.msra.mxu0 %v2992_v4 }
 0x2d5   :  { %2220 = vmatprep.subr.bf16.mxu0 %v2997_v5 }
 0x2d8   :  { %2221 = vmatpush1.bf16.msra.mxu0 %v2995_v6 }
 0x2d9   :  { %2222 = vmatprep.subr.bf16.mxu0 %v3000_v24 }
 0x2dc   :  { %2223 = vmatpush1.bf16.msra.mxu0 %v2998_v7 }
 0x2dd   :  { %2224 = vmatprep.subr.bf16.mxu0 %v3003_v8 }
 0x2e0   :  { %2225 = vmatpush1.bf16.msra.mxu0 %v3001_v0 }
 0x2e1   :  { %2226 = vmatprep.subr.bf16.mxu0 %v3006_v9 }
 0x2e4   :  { %2227 = vmatpush1.bf16.msra.mxu0 %v3004_v10 }
 0x2e5   :  { %2228 = vmatprep.subr.bf16.mxu0 %v3009_v11 }
 0x2e8   :  { %2229 = vmatpush1.bf16.msra.mxu0 %v3007_v12 }
 0x2e9   :  { %2230 = vmatprep.subr.bf16.mxu0 %v3012_v13 }
 0x2ec   :  { %2231 = vmatpush1.bf16.msra.mxu0 %v3010_v14 }
 0x2ed   :  { %2232 = vmatprep.subr.bf16.mxu0 %v3015_v15 }
 0x2f0   :  { %2233 = vmatpush1.bf16.msra.mxu0 %v3013_v16 }
 0x2f1   :  { %2234 = vmatprep.subr.bf16.mxu0 %v3018_v17 }
 0x2f4   :  { %2235 = vmatpush1.bf16.msra.mxu0 %v3016_v18 }
 0x2f5   :  { %2236 = vmatprep.subr.bf16.mxu0 %v3021_v19 }
 0x2f8   :  { %2237 = vmatpush1.bf16.msra.mxu0 %v3019_v20 }
 0x2f9   :  { %2238 = vmatprep.subr.bf16.mxu0 %v3024_v21 }
 0x2fa   :  { %v1503_v28 = vpop.f32.mrb[12].mxu1 }
 0x2fb   :  { %v1514_v30 = vmax.f32 %v1503_v28, 0.0  ;;  %v1505_v31 = vpop.f32.mrb[13].mxu1 }
 0x2fc   :  { %v1515_v22 = vmax.f32 %v1505_v31, 0.0  ;;  %v1507_v32 = vpop.f32.mrb[14].mxu1  ;;  %2239 = vmatpush1.bf16.msra.mxu0 %v3022_v23 }
 0x2fd   :  { %v1521_v34 = vsub.f32 %v1514_v30, %v85_v26  ;;  %v1508_v35 = vpop.f32.mrb[15].mxu1  ;;  %2240 = vmatprep.subr.bf16.mxu0 %v3027_v27 }
 0x2fe   :  { %v1522_v37 = vsub.f32 %v1515_v22, %v86_v29 }
 0x2ff   :  { %v1528_v38 = vmul.f32 %v3275_v63, %v1521_v34 }
 0x300   :  { %v1529_v39 = vmul.f32 %v3275_v63, %v1522_v37  ;;  %2241 = vmatpush1.bf16.msra.mxu0 %v3025_v33  ;;  %v1647_v63 = vrot.slane %v1638_v48, %v1646_v49 }
 0x301   :  { %v1534_v41 = vadd.f32 %v1528_v38, %v85_v26  ;;  %2242 = vmatprep.subr.bf16.mxu0 %v3030_v36 }
 0x302   :  { %v1535_v42 = vadd.f32 %v1529_v39, %v86_v29 }
 0x303   :  { %v1540_v44 = vpack.c.bf16 %v1534_v41, %v1534_v41 }
 0x304   :  { %2243 = vmatpush1.bf16.msra.mxu0 %v3028_v40  ;;  %v1541_v43 = vpack.c.bf16 %v1535_v42, %v1535_v42 }
 0x306   :  { %2244 = vmatprep.mubr.bf16.mxu0 %v1541_v43 }
 0x307   :  { %2245 = vmatmul.mubr.bf16.vlgmr.msra.gmra.mrb[4].mxu0 %v1540_v44 }
 0x3da   :  { %v2246_v51 = vpop.f32.mrb[4].mxu0 }
 0x3db   :  { %v2570_v52 = vadd.f32 %v2246_v51, %v1643_v50  ;;  %v2248_v53 = vpop.f32.mrb[5].mxu0 }
 0x3dc   :  { %v2571_v54 = vadd.f32 %v2248_v53, %v1647_v63  ;;  %v2250_v55 = vpop.f32.mrb[6].mxu0 }
 0x3dd   :  { %v2253_v56 = vmax.f32 %v2570_v52, 0.0  ;;  %v2251_v57 = vpop.f32.mrb[7].mxu0 }
 0x3de   :  { %v2254_v58 = vmax.f32 %v2571_v54, 0.0 }
 0x3df   :  { %2255 = vst [vmem:[#allocation11] sm:$0xff] %v2253_v56 }
 0x3e0   :  { %2256 = vst [vmem:[#allocation11 + $0x8] sm:$0xff] %v2254_v58 }
 0x3e1   :  { %3133 = shalt.err (!%p3130_p8)
}
 0x3e2   :  { %s3134_s27 = scalar_lea.hbm %s3304_s6, 256 }
 0x3e3   :  { %p3135_p9 = scmp.ne.s32.totalorder %s3304_s6, %s3134_s27  ;;  %p3138_p10 = scmp.lt.u32.totalorder %s3134_s27, %s3304_s6 }
 0x3e5   :  { %p3140_p11 = pnand %p3138_p10, %p3135_p9 }
 0x3e7   :  { %3143 = shalt.err (!%p3140_p11)
}
 0x3e8   :  { %2266 = dma.vmem_to_hbm [thread:$0]  %s2264_s24, 256, %s3304_s6, [#allocation5]  }
 0x3e9   :  { %3150 = dma.done.wait [#allocation5], 256  }
 0x3ea   :  { %3151 = vsyncadd [#allocation5], 4294967040 }
 0x3eb   :  { %2270 = vsyncpa [#allocation4], 1 }
 0x3ec   :  { %2271 = vsyncpa [#allocation7], 1 }
 0x3ed   :  { %2272 = vsyncpa [#allocation10], 1 }
 0x3ee   :  { %2273 = vsyncpa [#allocation5], 1 }

</bundles_post_ra>
